<compile_context>
chip_gen: v6e
topology: v6e:2x2x1
jax: 0.10.0
libtpu: 0.0.40
codegen_flags: <defaults>
</compile_context>

<pallas_src>
import math
import jax
import jax.numpy as jnp
from jax.experimental import pallas as pl
from jax.experimental.pallas import tpu as pltpu


# ----------------------------------------------------------------------------
# The single fused DEIM kernel (backbone matmul -> encoder -> decoder -> heads).
# Everything fits trivially in VMEM at these shapes (<100 KiB total), so there is
# no grid: one invocation, all operands as whole-array VMEM refs.
# ----------------------------------------------------------------------------
def _make_deim_kernel(B, N, Q, D, C):
    f32 = jnp.float32
    bf16 = jnp.bfloat16

    def mm(a, w_ref, b_ref=None):
        # MXU matmul: bf16 operands, f32 accumulation; epilogue stays in f32.
        y = jnp.dot(a.astype(bf16), w_ref[...], preferred_element_type=f32)
        if b_ref is not None:
            y = y + b_ref[...]
        return y

    def softmax_av(q2, k2, v2):
        # scores = q @ k^T via dot_general contracting last dims (no explicit transpose).
        s = jax.lax.dot_general(q2.astype(bf16), k2.astype(bf16),
                                (((1,), (1,)), ((), ())),
                                preferred_element_type=f32)
        m = jnp.max(s, axis=-1, keepdims=True)
        p = jnp.exp(s - m)
        l = jnp.sum(p, axis=-1, keepdims=True)
        o = jnp.dot(p.astype(bf16), v2.astype(bf16), preferred_element_type=f32)
        return o * pl.reciprocal(l, approx=True)

    def kernel(patches, bb_w, bb_b,
               eqkv_w, eqkv_b, eo_w, eo_b, f1_w, f1_b, f2_w, f2_b,
               qry, dq_w, dq_b, dkv_w, dkv_b, do_w, do_b, hd_w, hd_b,
               out_ref):
        # ---- backbone: conv-as-matmul over im2col patches + ReLU ------------
        tok = jnp.maximum(mm(patches[...], bb_w, bb_b), 0.0)            # [B*N, D] f32

        # ---- encoder: fused QKV projection (scale folded into Q weights) ----
        qkv = mm(tok, eqkv_w, eqkv_b)                                   # [B*N, 3D]
        q = qkv[:, 0:D]
        k = qkv[:, D:2 * D]
        v = qkv[:, 2 * D:3 * D]
        attn = jnp.concatenate(
            [softmax_av(q[b * N:(b + 1) * N], k[b * N:(b + 1) * N],
                        v[b * N:(b + 1) * N]) for b in range(B)],
            axis=0)                                                     # [B*N, D]
        tok = tok + mm(attn, eo_w, eo_b)                                # residual (in-kernel)
        h = jnp.maximum(mm(tok, f1_w, f1_b), 0.0)                       # [B*N, FFN]
        mem = tok + mm(h, f2_w, f2_b)                                   # [B*N, D]

        # ---- decoder: learned queries cross-attend over encoder memory ------
        qarr = qry[...]                                                 # [B*Q, D] f32
        dq = mm(qarr, dq_w, dq_b)                                       # scale pre-folded
        dkv = mm(mem, dkv_w, dkv_b)                                     # [B*N, 2D]
        dk = dkv[:, 0:D]
        dv = dkv[:, D:2 * D]
        dec = jnp.concatenate(
            [softmax_av(dq[b * Q:(b + 1) * Q], dk[b * N:(b + 1) * N],
                        dv[b * N:(b + 1) * N]) for b in range(B)],
            axis=0)                                                     # [B*Q, D]
        dec = qarr + mm(dec, do_w, do_b)                                # residual (in-kernel)

        # ---- fused class+box head; sigmoid only on the box columns ----------
        head = mm(dec, hd_w, hd_b)                                      # [B*Q, C+4]
        col = jax.lax.broadcasted_iota(jnp.int32, head.shape, 1)
        head = jnp.where(col >= C, jax.nn.sigmoid(head), head)
        out_ref[...] = head.astype(out_ref.dtype)

    return kernel


# ----------------------------------------------------------------------------
# Parameter construction (deterministic, synthetic).
# ----------------------------------------------------------------------------
def make_params(key, cin=4, d=32, ffn=64, num_queries=8, num_classes=4):
    ks = jax.random.split(key, 20)
    p = {}
    # backbone: 3x3 conv, stride 2, pad 1: weight stored as [9*cin, d] (im2col layout)
    p["bb_w"] = jax.random.normal(ks[0], (9 * cin, d), jnp.float32) * 0.1
    p["bb_b"] = jnp.zeros((1, d), jnp.float32)
    for i, name in enumerate(["enc_q", "enc_k", "enc_v", "enc_o"]):
        p[name + "_w"] = jax.random.normal(ks[1 + i], (d, d), jnp.float32) * 0.1
        p[name + "_b"] = jnp.zeros((1, d), jnp.float32)
    p["enc_f1_w"] = jax.random.normal(ks[5], (d, ffn), jnp.float32) * 0.1
    p["enc_f1_b"] = jnp.zeros((1, ffn), jnp.float32)
    p["enc_f2_w"] = jax.random.normal(ks[6], (ffn, d), jnp.float32) * 0.1
    p["enc_f2_b"] = jnp.zeros((1, d), jnp.float32)
    p["queries"] = jax.random.normal(ks[7], (num_queries, d), jnp.float32) * 0.1
    for i, name in enumerate(["dec_q", "dec_k", "dec_v", "dec_o"]):
        p[name + "_w"] = jax.random.normal(ks[8 + i], (d, d), jnp.float32) * 0.1
        p[name + "_b"] = jnp.zeros((1, d), jnp.float32)
    p["cls_w"] = jax.random.normal(ks[12], (d, num_classes), jnp.float32) * 0.1
    p["cls_b"] = jnp.zeros((1, num_classes), jnp.float32)
    p["box_w"] = jax.random.normal(ks[13], (d, 4), jnp.float32) * 0.1
    p["box_b"] = jnp.zeros((1, 4), jnp.float32)
    return p


# ----------------------------------------------------------------------------
# One-time parameter fusion: concat QKV / KV / heads, fold the 1/sqrt(D) attention
# scale into the Q projections, cast weights to bf16 (biases stay f32 for the epilogue),
# and pre-tile the learned queries over the batch.
# ----------------------------------------------------------------------------
def fuse_params(p, batch_size):
    bf16 = jnp.bfloat16
    D = p["enc_q_w"].shape[0]
    Q = p["queries"].shape[0]
    C = p["cls_w"].shape[1]
    scale = 1.0 / math.sqrt(D)
    fp = {"D": D, "Q": Q, "C": C}
    fp["bb_w"] = p["bb_w"].astype(bf16)
    fp["bb_b"] = p["bb_b"]
    fp["enc_qkv_w"] = jnp.concatenate(
        [p["enc_q_w"] * scale, p["enc_k_w"], p["enc_v_w"]], axis=1).astype(bf16)
    fp["enc_qkv_b"] = jnp.concatenate(
        [p["enc_q_b"] * scale, p["enc_k_b"], p["enc_v_b"]], axis=1)
    fp["enc_o_w"] = p["enc_o_w"].astype(bf16)
    fp["enc_o_b"] = p["enc_o_b"]
    fp["enc_f1_w"] = p["enc_f1_w"].astype(bf16)
    fp["enc_f1_b"] = p["enc_f1_b"]
    fp["enc_f2_w"] = p["enc_f2_w"].astype(bf16)
    fp["enc_f2_b"] = p["enc_f2_b"]
    fp["queries_tiled"] = jnp.tile(p["queries"], (batch_size, 1))       # [B*Q, D] f32
    fp["dec_q_w"] = (p["dec_q_w"] * scale).astype(bf16)
    fp["dec_q_b"] = p["dec_q_b"] * scale
    fp["dec_kv_w"] = jnp.concatenate([p["dec_k_w"], p["dec_v_w"]], axis=1).astype(bf16)
    fp["dec_kv_b"] = jnp.concatenate([p["dec_k_b"], p["dec_v_b"]], axis=1)
    fp["dec_o_w"] = p["dec_o_w"].astype(bf16)
    fp["dec_o_b"] = p["dec_o_b"]
    fp["head_w"] = jnp.concatenate([p["cls_w"], p["box_w"]], axis=1).astype(bf16)
    fp["head_b"] = jnp.concatenate([p["cls_b"], p["box_b"]], axis=1)
    return fp


# ----------------------------------------------------------------------------
# DEIM forward: x -> backbone -> encoder -> decoder   (one pallas_call total)
# ----------------------------------------------------------------------------
def deim_forward(fp, x_nchw):
    B, Cin, H, W = x_nchw.shape
    D, Q, C = fp["D"], fp["Q"], fp["C"]

    # ---- im2col glue for Conv2d(Cin, D, 3, stride=2, pad=1); NCHW -> NHWC ----
    x = jnp.transpose(x_nchw, (0, 2, 3, 1))                      # [B, H, W, Cin]
    xp = jnp.pad(x, ((0, 0), (1, 1), (1, 1), (0, 0)))
    Ho, Wo = H // 2, W // 2
    patches = jnp.concatenate(
        [xp[:, dh:dh + H:2, dw:dw + W:2, :] for dh in range(3) for dw in range(3)],
        axis=-1)                                                 # [B, Ho, Wo, 9*Cin]
    N = Ho * Wo
    patches2d = patches.reshape(B * N, 9 * Cin).astype(jnp.bfloat16)
    # TODO(synk): at real DEIM resolutions, do the patch gather inside the kernel
    # (index_map over output rows on the padded NHWC input) instead of materializing
    # a 9x-expanded im2col tensor in HBM.
    # TODO(synk): on v7x (2 TensorCores) shard the batch/token axis via pl.core_map /
    # core-parallel grid when scaling up; at these toy sizes one fused call is optimal.

    kernel = _make_deim_kernel(B, N, Q, D, C)
    vmem = pl.BlockSpec(memory_space=pltpu.MemorySpace.VMEM)
    head = pl.pallas_call(
        kernel,
        out_shape=jax.ShapeDtypeStruct((B * Q, C + 4), jnp.float32),
        in_specs=[vmem] * 20,
        out_specs=vmem,
    )(patches2d,
      fp["bb_w"], fp["bb_b"],
      fp["enc_qkv_w"], fp["enc_qkv_b"], fp["enc_o_w"], fp["enc_o_b"],
      fp["enc_f1_w"], fp["enc_f1_b"], fp["enc_f2_w"], fp["enc_f2_b"],
      fp["queries_tiled"], fp["dec_q_w"], fp["dec_q_b"],
      fp["dec_kv_w"], fp["dec_kv_b"], fp["dec_o_w"], fp["dec_o_b"],
      fp["head_w"], fp["head_b"])

    head = head.reshape(B, Q, C + 4)
    # TODO(synk): PyTorch DEIM passes `targets` to the decoder for denoising/aux losses
    # during training; the inference path (targets=None) is what is reproduced here.
    return {"pred_logits": head[..., :C], "pred_boxes": head[..., C:]}


if __name__ == "__main__":
    key = jax.random.PRNGKey(0)
    k_param, k_x = jax.random.split(key)
    params = make_params(k_param, cin=4, d=32, ffn=64, num_queries=8, num_classes=4)
    # Input mirrors PyTorch NCHW: [batch=2, channels=4, H=16, W=16]
    x = jax.random.normal(k_x, (2, 4, 16, 16), jnp.float32)

    fparams = fuse_params(params, batch_size=x.shape[0])
    out = deim_forward(fparams, x)
    jax.block_until_ready(out)
    assert out["pred_logits"].shape == (2, 8, 4)
    assert out["pred_boxes"].shape == (2, 8, 4)
    print("KERNEL_OK")
</pallas_src>

<mosaic_0001>
module attributes {stable_mosaic.version = 11 : i64} {
  func.func @kernel(%arg0: memref<128x36xbf16, #tpu.memory_space<vmem>>, %arg1: memref<36x32xbf16, #tpu.memory_space<vmem>>, %arg2: memref<1x32xf32, #tpu.memory_space<vmem>>, %arg3: memref<32x96xbf16, #tpu.memory_space<vmem>>, %arg4: memref<1x96xf32, #tpu.memory_space<vmem>>, %arg5: memref<32x32xbf16, #tpu.memory_space<vmem>>, %arg6: memref<1x32xf32, #tpu.memory_space<vmem>>, %arg7: memref<32x64xbf16, #tpu.memory_space<vmem>>, %arg8: memref<1x64xf32, #tpu.memory_space<vmem>>, %arg9: memref<64x32xbf16, #tpu.memory_space<vmem>>, %arg10: memref<1x32xf32, #tpu.memory_space<vmem>>, %arg11: memref<16x32xf32, #tpu.memory_space<vmem>>, %arg12: memref<32x32xbf16, #tpu.memory_space<vmem>>, %arg13: memref<1x32xf32, #tpu.memory_space<vmem>>, %arg14: memref<32x64xbf16, #tpu.memory_space<vmem>>, %arg15: memref<1x64xf32, #tpu.memory_space<vmem>>, %arg16: memref<32x32xbf16, #tpu.memory_space<vmem>>, %arg17: memref<1x32xf32, #tpu.memory_space<vmem>>, %arg18: memref<32x8xbf16, #tpu.memory_space<vmem>>, %arg19: memref<1x8xf32, #tpu.memory_space<vmem>>, %arg20: memref<16x8xf32, #tpu.memory_space<vmem>>) attributes {dimension_semantics = [], scalar_prefetch = 0 : i64, scratch_operands = 0 : i64, tpu.core_type = #tpu.core_type<tc>} {
    %c0 = arith.constant 0 : index
    %c0_0 = arith.constant 0 : index
    %0 = vector.load %arg0[%c0, %c0_0] : memref<128x36xbf16, #tpu.memory_space<vmem>>, vector<128x36xbf16>
    %c0_1 = arith.constant 0 : index
    %c0_2 = arith.constant 0 : index
    %1 = vector.load %arg1[%c0_1, %c0_2] : memref<36x32xbf16, #tpu.memory_space<vmem>>, vector<36x32xbf16>
    %cst = arith.constant dense<0.000000e+00> : vector<128x32xf32>
    %2 = tpu.matmul %0, %1, %cst {dimension_numbers = #tpu.dot_dimension_numbers<[1], [0], [0], [1], [0, 0, 1, 1], [], []>} : vector<128x36xbf16>, vector<36x32xbf16>, vector<128x32xf32> -> vector<128x32xf32>
    %c0_3 = arith.constant 0 : index
    %c0_4 = arith.constant 0 : index
    %3 = vector.load %arg2[%c0_3, %c0_4] : memref<1x32xf32, #tpu.memory_space<vmem>>, vector<1x32xf32>
    %4 = vector.broadcast %3 : vector<1x32xf32> to vector<128x32xf32>
    %5 = arith.addf %2, %4 : vector<128x32xf32>
    %cst_5 = arith.constant 0.000000e+00 : f32
    %6 = vector.broadcast %cst_5 : f32 to vector<128x32xf32>
    %7 = arith.maximumf %5, %6 : vector<128x32xf32>
    %8 = arith.truncf %7 : vector<128x32xf32> to vector<128x32xbf16>
    %c0_6 = arith.constant 0 : index
    %c0_7 = arith.constant 0 : index
    %9 = vector.load %arg3[%c0_6, %c0_7] : memref<32x96xbf16, #tpu.memory_space<vmem>>, vector<32x96xbf16>
    %cst_8 = arith.constant dense<0.000000e+00> : vector<128x96xf32>
    %10 = tpu.matmul %8, %9, %cst_8 {dimension_numbers = #tpu.dot_dimension_numbers<[1], [0], [0], [1], [0, 0, 1, 1], [], []>} : vector<128x32xbf16>, vector<32x96xbf16>, vector<128x96xf32> -> vector<128x96xf32>
    %c0_9 = arith.constant 0 : index
    %c0_10 = arith.constant 0 : index
    %11 = vector.load %arg4[%c0_9, %c0_10] : memref<1x96xf32, #tpu.memory_space<vmem>>, vector<1x96xf32>
    %12 = vector.broadcast %11 : vector<1x96xf32> to vector<128x96xf32>
    %13 = arith.addf %10, %12 : vector<128x96xf32>
    %14 = vector.extract_strided_slice %13 {offsets = [0, 0], sizes = [128, 32], strides = [1, 1]} : vector<128x96xf32> to vector<128x32xf32>
    %15 = vector.extract_strided_slice %13 {offsets = [0, 32], sizes = [128, 32], strides = [1, 1]} : vector<128x96xf32> to vector<128x32xf32>
    %16 = vector.extract_strided_slice %13 {offsets = [0, 64], sizes = [128, 32], strides = [1, 1]} : vector<128x96xf32> to vector<128x32xf32>
    %17 = vector.extract_strided_slice %14 {offsets = [0, 0], sizes = [64, 32], strides = [1, 1]} : vector<128x32xf32> to vector<64x32xf32>
    %18 = vector.extract_strided_slice %15 {offsets = [0, 0], sizes = [64, 32], strides = [1, 1]} : vector<128x32xf32> to vector<64x32xf32>
    %19 = vector.extract_strided_slice %16 {offsets = [0, 0], sizes = [64, 32], strides = [1, 1]} : vector<128x32xf32> to vector<64x32xf32>
    %20 = arith.truncf %17 : vector<64x32xf32> to vector<64x32xbf16>
    %21 = arith.truncf %18 : vector<64x32xf32> to vector<64x32xbf16>
    %cst_11 = arith.constant dense<0.000000e+00> : vector<64x64xf32>
    %22 = tpu.matmul %20, %21, %cst_11 {dimension_numbers = #tpu.dot_dimension_numbers<[1], [1], [0], [0], [0, 0, 1, 0], [], []>} : vector<64x32xbf16>, vector<64x32xbf16>, vector<64x64xf32> -> vector<64x64xf32>
    %cst_12 = arith.constant dense<0xFF800000> : vector<64xf32>
    %23 = vector.multi_reduction <maximumf>, %22, %cst_12 [1] : vector<64x64xf32> to vector<64xf32>
    %24 = vector.shape_cast %23 : vector<64xf32> to vector<64x1xf32>
    %25 = vector.broadcast %24 : vector<64x1xf32> to vector<64x64xf32>
    %26 = arith.subf %22, %25 : vector<64x64xf32>
    %27 = math.exp %26 : vector<64x64xf32>
    %cst_13 = arith.constant dense<0.000000e+00> : vector<64xf32>
    %28 = vector.multi_reduction <add>, %27, %cst_13 [1] : vector<64x64xf32> to vector<64xf32>
    %29 = vector.shape_cast %28 : vector<64xf32> to vector<64x1xf32>
    %30 = arith.truncf %27 : vector<64x64xf32> to vector<64x64xbf16>
    %31 = arith.truncf %19 : vector<64x32xf32> to vector<64x32xbf16>
    %cst_14 = arith.constant dense<0.000000e+00> : vector<64x32xf32>
    %32 = tpu.matmul %30, %31, %cst_14 {dimension_numbers = #tpu.dot_dimension_numbers<[1], [0], [0], [1], [0, 0, 1, 1], [], []>} : vector<64x64xbf16>, vector<64x32xbf16>, vector<64x32xf32> -> vector<64x32xf32>
    %33 = tpu.reciprocal %29 {approx = true} : vector<64x1xf32> -> vector<64x1xf32>
    %34 = vector.broadcast %33 : vector<64x1xf32> to vector<64x32xf32>
    %35 = arith.mulf %32, %34 : vector<64x32xf32>
    %36 = vector.extract_strided_slice %14 {offsets = [64, 0], sizes = [64, 32], strides = [1, 1]} : vector<128x32xf32> to vector<64x32xf32>
    %37 = vector.extract_strided_slice %15 {offsets = [64, 0], sizes = [64, 32], strides = [1, 1]} : vector<128x32xf32> to vector<64x32xf32>
    %38 = vector.extract_strided_slice %16 {offsets = [64, 0], sizes = [64, 32], strides = [1, 1]} : vector<128x32xf32> to vector<64x32xf32>
    %39 = arith.truncf %36 : vector<64x32xf32> to vector<64x32xbf16>
    %40 = arith.truncf %37 : vector<64x32xf32> to vector<64x32xbf16>
    %cst_15 = arith.constant dense<0.000000e+00> : vector<64x64xf32>
    %41 = tpu.matmul %39, %40, %cst_15 {dimension_numbers = #tpu.dot_dimension_numbers<[1], [1], [0], [0], [0, 0, 1, 0], [], []>} : vector<64x32xbf16>, vector<64x32xbf16>, vector<64x64xf32> -> vector<64x64xf32>
    %cst_16 = arith.constant dense<0xFF800000> : vector<64xf32>
    %42 = vector.multi_reduction <maximumf>, %41, %cst_16 [1] : vector<64x64xf32> to vector<64xf32>
    %43 = vector.shape_cast %42 : vector<64xf32> to vector<64x1xf32>
    %44 = vector.broadcast %43 : vector<64x1xf32> to vector<64x64xf32>
    %45 = arith.subf %41, %44 : vector<64x64xf32>
    %46 = math.exp %45 : vector<64x64xf32>
    %cst_17 = arith.constant dense<0.000000e+00> : vector<64xf32>
    %47 = vector.multi_reduction <add>, %46, %cst_17 [1] : vector<64x64xf32> to vector<64xf32>
    %48 = vector.shape_cast %47 : vector<64xf32> to vector<64x1xf32>
    %49 = arith.truncf %46 : vector<64x64xf32> to vector<64x64xbf16>
    %50 = arith.truncf %38 : vector<64x32xf32> to vector<64x32xbf16>
    %cst_18 = arith.constant dense<0.000000e+00> : vector<64x32xf32>
    %51 = tpu.matmul %49, %50, %cst_18 {dimension_numbers = #tpu.dot_dimension_numbers<[1], [0], [0], [1], [0, 0, 1, 1], [], []>} : vector<64x64xbf16>, vector<64x32xbf16>, vector<64x32xf32> -> vector<64x32xf32>
    %52 = tpu.reciprocal %48 {approx = true} : vector<64x1xf32> -> vector<64x1xf32>
    %53 = vector.broadcast %52 : vector<64x1xf32> to vector<64x32xf32>
    %54 = arith.mulf %51, %53 : vector<64x32xf32>
    %55 = tpu.concatenate %35, %54 in 0 : vector<64x32xf32>, vector<64x32xf32> -> vector<128x32xf32>
    %56 = arith.truncf %55 : vector<128x32xf32> to vector<128x32xbf16>
    %c0_19 = arith.constant 0 : index
    %c0_20 = arith.constant 0 : index
    %57 = vector.load %arg5[%c0_19, %c0_20] : memref<32x32xbf16, #tpu.memory_space<vmem>>, vector<32x32xbf16>
    %cst_21 = arith.constant dense<0.000000e+00> : vector<128x32xf32>
    %58 = tpu.matmul %56, %57, %cst_21 {dimension_numbers = #tpu.dot_dimension_numbers<[1], [0], [0], [1], [0, 0, 1, 1], [], []>} : vector<128x32xbf16>, vector<32x32xbf16>, vector<128x32xf32> -> vector<128x32xf32>
    %c0_22 = arith.constant 0 : index
    %c0_23 = arith.constant 0 : index
    %59 = vector.load %arg6[%c0_22, %c0_23] : memref<1x32xf32, #tpu.memory_space<vmem>>, vector<1x32xf32>
    %60 = vector.broadcast %59 : vector<1x32xf32> to vector<128x32xf32>
    %61 = arith.addf %58, %60 : vector<128x32xf32>
    %62 = arith.addf %7, %61 : vector<128x32xf32>
    %63 = arith.truncf %62 : vector<128x32xf32> to vector<128x32xbf16>
    %c0_24 = arith.constant 0 : index
    %c0_25 = arith.constant 0 : index
    %64 = vector.load %arg7[%c0_24, %c0_25] : memref<32x64xbf16, #tpu.memory_space<vmem>>, vector<32x64xbf16>
    %cst_26 = arith.constant dense<0.000000e+00> : vector<128x64xf32>
    %65 = tpu.matmul %63, %64, %cst_26 {dimension_numbers = #tpu.dot_dimension_numbers<[1], [0], [0], [1], [0, 0, 1, 1], [], []>} : vector<128x32xbf16>, vector<32x64xbf16>, vector<128x64xf32> -> vector<128x64xf32>
    %c0_27 = arith.constant 0 : index
    %c0_28 = arith.constant 0 : index
    %66 = vector.load %arg8[%c0_27, %c0_28] : memref<1x64xf32, #tpu.memory_space<vmem>>, vector<1x64xf32>
    %67 = vector.broadcast %66 : vector<1x64xf32> to vector<128x64xf32>
    %68 = arith.addf %65, %67 : vector<128x64xf32>
    %cst_29 = arith.constant 0.000000e+00 : f32
    %69 = vector.broadcast %cst_29 : f32 to vector<128x64xf32>
    %70 = arith.maximumf %68, %69 : vector<128x64xf32>
    %71 = arith.truncf %70 : vector<128x64xf32> to vector<128x64xbf16>
    %c0_30 = arith.constant 0 : index
    %c0_31 = arith.constant 0 : index
    %72 = vector.load %arg9[%c0_30, %c0_31] : memref<64x32xbf16, #tpu.memory_space<vmem>>, vector<64x32xbf16>
    %cst_32 = arith.constant dense<0.000000e+00> : vector<128x32xf32>
    %73 = tpu.matmul %71, %72, %cst_32 {dimension_numbers = #tpu.dot_dimension_numbers<[1], [0], [0], [1], [0, 0, 1, 1], [], []>} : vector<128x64xbf16>, vector<64x32xbf16>, vector<128x32xf32> -> vector<128x32xf32>
    %c0_33 = arith.constant 0 : index
    %c0_34 = arith.constant 0 : index
    %74 = vector.load %arg10[%c0_33, %c0_34] : memref<1x32xf32, #tpu.memory_space<vmem>>, vector<1x32xf32>
    %75 = vector.broadcast %74 : vector<1x32xf32> to vector<128x32xf32>
    %76 = arith.addf %73, %75 : vector<128x32xf32>
    %77 = arith.addf %62, %76 : vector<128x32xf32>
    %c0_35 = arith.constant 0 : index
    %c0_36 = arith.constant 0 : index
    %78 = vector.load %arg11[%c0_35, %c0_36] : memref<16x32xf32, #tpu.memory_space<vmem>>, vector<16x32xf32>
    %79 = arith.truncf %78 : vector<16x32xf32> to vector<16x32xbf16>
    %c0_37 = arith.constant 0 : index
    %c0_38 = arith.constant 0 : index
    %80 = vector.load %arg12[%c0_37, %c0_38] : memref<32x32xbf16, #tpu.memory_space<vmem>>, vector<32x32xbf16>
    %cst_39 = arith.constant dense<0.000000e+00> : vector<16x32xf32>
    %81 = tpu.matmul %79, %80, %cst_39 {dimension_numbers = #tpu.dot_dimension_numbers<[1], [0], [0], [1], [0, 0, 1, 1], [], []>} : vector<16x32xbf16>, vector<32x32xbf16>, vector<16x32xf32> -> vector<16x32xf32>
    %c0_40 = arith.constant 0 : index
    %c0_41 = arith.constant 0 : index
    %82 = vector.load %arg13[%c0_40, %c0_41] : memref<1x32xf32, #tpu.memory_space<vmem>>, vector<1x32xf32>
    %83 = vector.broadcast %82 : vector<1x32xf32> to vector<16x32xf32>
    %84 = arith.addf %81, %83 : vector<16x32xf32>
    %85 = arith.truncf %77 : vector<128x32xf32> to vector<128x32xbf16>
    %c0_42 = arith.constant 0 : index
    %c0_43 = arith.constant 0 : index
    %86 = vector.load %arg14[%c0_42, %c0_43] : memref<32x64xbf16, #tpu.memory_space<vmem>>, vector<32x64xbf16>
    %cst_44 = arith.constant dense<0.000000e+00> : vector<128x64xf32>
    %87 = tpu.matmul %85, %86, %cst_44 {dimension_numbers = #tpu.dot_dimension_numbers<[1], [0], [0], [1], [0, 0, 1, 1], [], []>} : vector<128x32xbf16>, vector<32x64xbf16>, vector<128x64xf32> -> vector<128x64xf32>
    %c0_45 = arith.constant 0 : index
    %c0_46 = arith.constant 0 : index
    %88 = vector.load %arg15[%c0_45, %c0_46] : memref<1x64xf32, #tpu.memory_space<vmem>>, vector<1x64xf32>
    %89 = vector.broadcast %88 : vector<1x64xf32> to vector<128x64xf32>
    %90 = arith.addf %87, %89 : vector<128x64xf32>
    %91 = vector.extract_strided_slice %90 {offsets = [0, 0], sizes = [128, 32], strides = [1, 1]} : vector<128x64xf32> to vector<128x32xf32>
    %92 = vector.extract_strided_slice %90 {offsets = [0, 32], sizes = [128, 32], strides = [1, 1]} : vector<128x64xf32> to vector<128x32xf32>
    %93 = vector.extract_strided_slice %84 {offsets = [0, 0], sizes = [8, 32], strides = [1, 1]} : vector<16x32xf32> to vector<8x32xf32>
    %94 = vector.extract_strided_slice %91 {offsets = [0, 0], sizes = [64, 32], strides = [1, 1]} : vector<128x32xf32> to vector<64x32xf32>
    %95 = vector.extract_strided_slice %92 {offsets = [0, 0], sizes = [64, 32], strides = [1, 1]} : vector<128x32xf32> to vector<64x32xf32>
    %96 = arith.truncf %93 : vector<8x32xf32> to vector<8x32xbf16>
    %97 = arith.truncf %94 : vector<64x32xf32> to vector<64x32xbf16>
    %cst_47 = arith.constant dense<0.000000e+00> : vector<8x64xf32>
    %98 = tpu.matmul %96, %97, %cst_47 {dimension_numbers = #tpu.dot_dimension_numbers<[1], [1], [0], [0], [0, 0, 1, 0], [], []>} : vector<8x32xbf16>, vector<64x32xbf16>, vector<8x64xf32> -> vector<8x64xf32>
    %cst_48 = arith.constant dense<0xFF800000> : vector<8xf32>
    %99 = vector.multi_reduction <maximumf>, %98, %cst_48 [1] : vector<8x64xf32> to vector<8xf32>
    %100 = vector.shape_cast %99 : vector<8xf32> to vector<8x1xf32>
    %101 = vector.broadcast %100 : vector<8x1xf32> to vector<8x64xf32>
    %102 = arith.subf %98, %101 : vector<8x64xf32>
    %103 = math.exp %102 : vector<8x64xf32>
    %cst_49 = arith.constant dense<0.000000e+00> : vector<8xf32>
    %104 = vector.multi_reduction <add>, %103, %cst_49 [1] : vector<8x64xf32> to vector<8xf32>
    %105 = vector.shape_cast %104 : vector<8xf32> to vector<8x1xf32>
    %106 = arith.truncf %103 : vector<8x64xf32> to vector<8x64xbf16>
    %107 = arith.truncf %95 : vector<64x32xf32> to vector<64x32xbf16>
    %cst_50 = arith.constant dense<0.000000e+00> : vector<8x32xf32>
    %108 = tpu.matmul %106, %107, %cst_50 {dimension_numbers = #tpu.dot_dimension_numbers<[1], [0], [0], [1], [0, 0, 1, 1], [], []>} : vector<8x64xbf16>, vector<64x32xbf16>, vector<8x32xf32> -> vector<8x32xf32>
    %109 = tpu.reciprocal %105 {approx = true} : vector<8x1xf32> -> vector<8x1xf32>
    %110 = vector.broadcast %109 : vector<8x1xf32> to vector<8x32xf32>
    %111 = arith.mulf %108, %110 : vector<8x32xf32>
    %112 = vector.extract_strided_slice %84 {offsets = [8, 0], sizes = [8, 32], strides = [1, 1]} : vector<16x32xf32> to vector<8x32xf32>
    %113 = vector.extract_strided_slice %91 {offsets = [64, 0], sizes = [64, 32], strides = [1, 1]} : vector<128x32xf32> to vector<64x32xf32>
    %114 = vector.extract_strided_slice %92 {offsets = [64, 0], sizes = [64, 32], strides = [1, 1]} : vector<128x32xf32> to vector<64x32xf32>
    %115 = arith.truncf %112 : vector<8x32xf32> to vector<8x32xbf16>
    %116 = arith.truncf %113 : vector<64x32xf32> to vector<64x32xbf16>
    %cst_51 = arith.constant dense<0.000000e+00> : vector<8x64xf32>
    %117 = tpu.matmul %115, %116, %cst_51 {dimension_numbers = #tpu.dot_dimension_numbers<[1], [1], [0], [0], [0, 0, 1, 0], [], []>} : vector<8x32xbf16>, vector<64x32xbf16>, vector<8x64xf32> -> vector<8x64xf32>
    %cst_52 = arith.constant dense<0xFF800000> : vector<8xf32>
    %118 = vector.multi_reduction <maximumf>, %117, %cst_52 [1] : vector<8x64xf32> to vector<8xf32>
    %119 = vector.shape_cast %118 : vector<8xf32> to vector<8x1xf32>
    %120 = vector.broadcast %119 : vector<8x1xf32> to vector<8x64xf32>
    %121 = arith.subf %117, %120 : vector<8x64xf32>
    %122 = math.exp %121 : vector<8x64xf32>
    %cst_53 = arith.constant dense<0.000000e+00> : vector<8xf32>
    %123 = vector.multi_reduction <add>, %122, %cst_53 [1] : vector<8x64xf32> to vector<8xf32>
    %124 = vector.shape_cast %123 : vector<8xf32> to vector<8x1xf32>
    %125 = arith.truncf %122 : vector<8x64xf32> to vector<8x64xbf16>
    %126 = arith.truncf %114 : vector<64x32xf32> to vector<64x32xbf16>
    %cst_54 = arith.constant dense<0.000000e+00> : vector<8x32xf32>
    %127 = tpu.matmul %125, %126, %cst_54 {dimension_numbers = #tpu.dot_dimension_numbers<[1], [0], [0], [1], [0, 0, 1, 1], [], []>} : vector<8x64xbf16>, vector<64x32xbf16>, vector<8x32xf32> -> vector<8x32xf32>
    %128 = tpu.reciprocal %124 {approx = true} : vector<8x1xf32> -> vector<8x1xf32>
    %129 = vector.broadcast %128 : vector<8x1xf32> to vector<8x32xf32>
    %130 = arith.mulf %127, %129 : vector<8x32xf32>
    %131 = tpu.concatenate %111, %130 in 0 : vector<8x32xf32>, vector<8x32xf32> -> vector<16x32xf32>
    %132 = arith.truncf %131 : vector<16x32xf32> to vector<16x32xbf16>
    %c0_55 = arith.constant 0 : index
    %c0_56 = arith.constant 0 : index
    %133 = vector.load %arg16[%c0_55, %c0_56] : memref<32x32xbf16, #tpu.memory_space<vmem>>, vector<32x32xbf16>
    %cst_57 = arith.constant dense<0.000000e+00> : vector<16x32xf32>
    %134 = tpu.matmul %132, %133, %cst_57 {dimension_numbers = #tpu.dot_dimension_numbers<[1], [0], [0], [1], [0, 0, 1, 1], [], []>} : vector<16x32xbf16>, vector<32x32xbf16>, vector<16x32xf32> -> vector<16x32xf32>
    %c0_58 = arith.constant 0 : index
    %c0_59 = arith.constant 0 : index
    %135 = vector.load %arg17[%c0_58, %c0_59] : memref<1x32xf32, #tpu.memory_space<vmem>>, vector<1x32xf32>
    %136 = vector.broadcast %135 : vector<1x32xf32> to vector<16x32xf32>
    %137 = arith.addf %134, %136 : vector<16x32xf32>
    %138 = arith.addf %78, %137 : vector<16x32xf32>
    %139 = arith.truncf %138 : vector<16x32xf32> to vector<16x32xbf16>
    %c0_60 = arith.constant 0 : index
    %c0_61 = arith.constant 0 : index
    %140 = vector.load %arg18[%c0_60, %c0_61] : memref<32x8xbf16, #tpu.memory_space<vmem>>, vector<32x8xbf16>
    %cst_62 = arith.constant dense<0.000000e+00> : vector<16x8xf32>
    %141 = tpu.matmul %139, %140, %cst_62 {dimension_numbers = #tpu.dot_dimension_numbers<[1], [0], [0], [1], [0, 0, 1, 1], [], []>} : vector<16x32xbf16>, vector<32x8xbf16>, vector<16x8xf32> -> vector<16x8xf32>
    %c0_63 = arith.constant 0 : index
    %c0_64 = arith.constant 0 : index
    %142 = vector.load %arg19[%c0_63, %c0_64] : memref<1x8xf32, #tpu.memory_space<vmem>>, vector<1x8xf32>
    %143 = vector.broadcast %142 : vector<1x8xf32> to vector<16x8xf32>
    %144 = arith.addf %141, %143 : vector<16x8xf32>
    %145 = tpu.iota {dimensions = array<i32: 1>} : vector<16x8xi32>
    %c4_i32 = arith.constant 4 : i32
    %146 = vector.broadcast %c4_i32 : i32 to vector<16x8xi32>
    %147 = arith.cmpi sge, %145, %146 : vector<16x8xi32>
    %148 = arith.negf %144 : vector<16x8xf32>
    %149 = math.exp %148 : vector<16x8xf32>
    %cst_65 = arith.constant 1.000000e+00 : f32
    %150 = vector.broadcast %cst_65 : f32 to vector<16x8xf32>
    %151 = arith.addf %150, %149 : vector<16x8xf32>
    %152 = arith.divf %150, %151 : vector<16x8xf32>
    %153 = arith.select %147, %152, %144 : vector<16x8xi1>, vector<16x8xf32>
    %c0_66 = arith.constant 0 : index
    %c0_67 = arith.constant 0 : index
    %154 = vector.load %arg20[%c0_66, %c0_67] : memref<16x8xf32, #tpu.memory_space<vmem>>, vector<16x8xf32>
    tpu.vector_store %arg20[%c0_66, %c0_67], %153 {strides = array<i32>} : memref<16x8xf32, #tpu.memory_space<vmem>>, vector<16x8xf32>,
    return
  }
}

</mosaic_0001>

<bundles_post_ra>
// kernel: tpu_custom_call.1
= control target key start
LH: loop header
LB: loop body
LE: loop exit
PB: predicated region body
PF: predicated region fallthrough
CT: control target
= control target key end

     0   :  { %vm174_vm0 = vcmask 1041408   ;;  %vm149_vm1 = vcmask 293888   ;;  %vm322_vm2 = vcmask 261120   ;;  %s2802_s25 = smov 96   ;;  %vm549_vm3 = vcmask 523264   ;;  %s3503_s1 = inlined_call_operand.vmem [shape: bf16[36,32], index: 1, kind: input, shape index: {}]   ;;  %s3504_s0 = inlined_call_operand.vmem [shape: bf16[128,36], index: 0, kind: input, shape index: {}]   ;;  %s3505_s3 = inlined_call_operand.vmem [shape: bf16[32,96], index: 3, kind: input, shape index: {}]   ;;  %s3506_s2 = inlined_call_operand.vmem [shape: f32[1,32], index: 2, kind: input, shape index: {}]   ;;  %s3507_s4 = inlined_call_operand.vmem [shape: f32[1,96], index: 4, kind: input, shape index: {}]   ;;  %s3508_s5 = inlined_call_operand.vmem [shape: bf16[32,32], index: 5, kind: input, shape index: {}]   ;;  %s3509_s7 = inlined_call_operand.vmem [shape: bf16[32,64], index: 7, kind: input, shape index: {}]   ;;  %s3510_s9 = inlined_call_operand.vmem [shape: bf16[64,32], index: 9, kind: input, shape index: {}]   ;;  %s3511_s6 = inlined_call_operand.vmem [shape: f32[1,32], index: 6, kind: input, shape index: {}]   ;;  %s3512_s12 = inlined_call_operand.vmem [shape: bf16[32,32], index: 12, kind: input, shape index: {}]   ;;  %s3513_s8 = inlined_call_operand.vmem [shape: f32[1,64], index: 8, kind: input, shape index: {}]   ;;  %s3514_s11 = inlined_call_operand.vmem [shape: f32[16,32], index: 11, kind: input, shape index: {}]   ;;  %s3515_s14 = inlined_call_operand.vmem [shape: bf16[32,64], index: 14, kind: input, shape index: {}]   ;;  %s3516_s10 = inlined_call_operand.vmem [shape: f32[1,32], index: 10, kind: input, shape index: {}]   ;;  %s3517_s15 = inlined_call_operand.vmem [shape: f32[1,64], index: 15, kind: input, shape index: {}]   ;;  %s3518_s13 = inlined_call_operand.vmem [shape: f32[1,32], index: 13, kind: input, shape index: {}]   ;;  %s3519_s16 = inlined_call_operand.vmem [shape: bf16[32,32], index: 16, kind: input, shape index: {}]   ;;  %s3520_s18 = inlined_call_operand.vmem [shape: bf16[32,8], index: 18, kind: input, shape index: {}]   ;;  %s3521_s17 = inlined_call_operand.vmem [shape: f32[1,32], index: 17, kind: input, shape index: {}]   ;;  %s3522_s19 = inlined_call_operand.vmem [shape: f32[1,8], index: 19, kind: input, shape index: {}]   ;;  %s3523_s20 = inlined_call_operand.vmem [shape: f32[16,8], index: 20, kind: output, shape index: {}]  }
   0x1   :  { %3527 = sst [smem:[#allocation2_spill]] %s3503_s1  ;;  %vm2805_vm4 = vmmov 0   ;;  %vm2176_vm6 = vcmask 64512  }
   0x2   :  { %3528 = sst [smem:[#allocation3_spill]] %s3504_s0 }
   0x3   :  { %3529 = sst [smem:[#allocation4_spill]] %s3505_s3 }
   0x4   :  { %3530 = sst [smem:[#allocation5_spill]] %s3506_s2  ;;  %s2803_s2 = smov 64  }
   0x5   :  { %3531 = sst [smem:[#allocation6_spill]] %s3507_s4 }
   0x6   :  { %s3532_s23 = sld [smem:[#allocation2_spill]] }
   0x7   :  { %s3533_s26 = sld [smem:[#allocation3_spill]] }
   0x8   :  { %s3534_s30 = sld [smem:[#allocation4_spill]] }
   0x9   :  { %s3536_s3 = sld [smem:[#allocation6_spill]] }
   0xc   :  { %v2693_v0 = vld [vmem:[%s3532_s23 + $0x10] ss:$0 sps:$4 sm:$0x33]   ;;  %v2694_v1 = vld [vmem:[%s3532_s23 + $0x8] sm:$0xff]   ;;  %v2695_v4 = vld [vmem:[%s3532_s23] sm:$0xff]   ;;  %s3535_s23 = sld [smem:[#allocation5_spill]] }
   0xd   :  { %2680 = vmatprep.subr.msk.bf16.mxu0 %vm174_vm0, %v2693_v0  ;;  %v176_v2 = vsel %vm174_vm0, %v2693_v0, 0  ;;  %v2696_v3 = vld [vmem:[%s3533_s26] sm:$0xff]   ;;  %v2697_v5 = vld [vmem:[%s3533_s26 + $0x8] sm:$0xff]   ;;  %v2698_v6 = vld [vmem:[%s3533_s26 + $0x10] sm:$0xff]  }
   0xe   :  { %2419 = vmatpush3.bf16.msra.mxu0 %v176_v2  ;;  %2424 = vmatprep.mubr.msk.bf16.mxu0 %vm149_vm1, %v2696_v3  ;;  %v2699_v7 = vld [vmem:[%s3533_s26 + $0x18] sm:$0xff]   ;;  %v2700_v8 = vld [vmem:[%s3533_s26 + $0x20] sm:$0xff]   ;;  %v2701_v9 = vld [vmem:[%s3533_s26 + $0x28] sm:$0xff]  }
   0xf   :  { %2420 = vmatprep.subr.bf16.mxu0 %v2694_v1  ;;  %v2702_v10 = vld [vmem:[%s3533_s26 + $0x30] sm:$0xff]   ;;  %v2703_v11 = vld [vmem:[%s3533_s26 + $0x38] sm:$0xff]   ;;  %v2704_v12 = vld [vmem:[%s3534_s30 + $0x8] sm:$0xff]  }
  0x10   :  { %2440 = vmatprep.subr.bf16.mxu1 %v2704_v12  ;;  %v2705_v13 = vld [vmem:[%s3534_s30] sm:$0xff]  }
  0x11   :  { %2441 = vmatpush3.bf16.msra.mxu1 %v2704_v12 }
  0x12   :  { %2421 = vmatpush3.bf16.msra.mxu0 %v2694_v1  ;;  %2442 = vmatprep.subr.bf16.mxu1 %v2705_v13  ;;  %v2183_v16 = vld [vmem:[%s3535_s23] ss:$0 sm:$0xff] }
  0x13   :  { %2422 = vmatprep.subr.bf16.mxu0 %v2695_v4 }
  0x15   :  { %2443 = vmatpush3.bf16.msra.mxu1 %v2705_v13 }
  0x16   :  { %2423 = vmatpush3.bf16.msra.mxu0 %v2695_v4 }
  0x19   :  { %2425 = vmatmul.mubr.msk.bf16.vlgmr.msra.gmra.mxu0 %vm149_vm1, %v2697_v5 }
  0x1a   :  { %2428 = vmatprep.mubr.msk.bf16.mxu0 %vm149_vm1, %v2698_v6 }
  0x21   :  { %2429 = vmatmul.mubr.msk.bf16.gmra.mxu0 %vm149_vm1, %v2699_v7 }
  0x22   :  { %2432 = vmatprep.mubr.msk.bf16.mxu0 %vm149_vm1, %v2700_v8  ;;  %v2203_v8 = vld [vmem:[%s3536_s3] ss:$0 sm:$0xff] }
  0x29   :  { %2433 = vmatmul.mubr.msk.bf16.gmra.mxu0 %vm149_vm1, %v2701_v9 }
  0x2a   :  { %2436 = vmatprep.mubr.msk.bf16.mxu0 %vm149_vm1, %v2702_v10 }
  0x31   :  { %2437 = vmatmul.mubr.msk.bf16.gmra.mxu0 %vm149_vm1, %v2703_v11 }
  0xd9   :  { %v2426_v14 = vpop.f32.mrf.mxu0 }
  0xda   :  { %v2965_v20 = vadd.f32 %v2426_v14, %v2183_v16 }
  0xdb   :  { %v212_v15 = vpop.f32.mrf.mxu0 }
  0xdc   :  { %v2961_v18 = vadd.f32 %v2183_v16, %v212_v15  ;;  %v277_v27 = vmax.f32 %v2965_v20, 0.0 }
  0xdd   :  { %v2427_v17 = vpop.f32.mrf.mxu0 }
  0xde   :  { %v2963_v19 = vadd.f32 %v2427_v17, %v2183_v16  ;;  %v275_v25 = vmax.f32 %v2961_v18, 0.0 }
  0xdf   :  { %v215_v21 = vpop.f32.mrf.mxu0 }
  0xe0   :  { %v2967_v22 = vadd.f32 %v2183_v16, %v215_v21  ;;  %v278_v23 = vmax.f32 %v2963_v19, 0.0 }
  0xe1   :  { %v2430_v24 = vpop.f32.mrf.mxu0 }
  0xe2   :  { %v276_v26 = vmax.f32 %v2967_v22, 0.0  ;;  %v292_v30 = vpack.c.bf16 %v278_v23, %v277_v27  ;;  %v2986_v34 = vadd.f32 %v2430_v24, %v2183_v16 }
  0xe3   :  { %v228_v28 = vpop.f32.mrf.mxu0 }
  0xe4   :  { %v291_v29 = vpack.c.bf16 %v276_v26, %v275_v25  ;;  %v2981_v32 = vadd.f32 %v2183_v16, %v228_v28  ;;  %v281_v41 = vmax.f32 %v2986_v34, 0.0 }
  0xe5   :  { %v2431_v31 = vpop.f32.mrf.mxu0 }
  0xe6   :  { %v2983_v33 = vadd.f32 %v2431_v31, %v2183_v16  ;;  %2444 = vmatprep.mubr.msk.bf16.mxu1 %vm322_vm2, %v291_v29  ;;  %v279_v39 = vmax.f32 %v2981_v32, 0.0 }
  0xe7   :  { %v231_v35 = vpop.f32.mrf.mxu0  ;;  %2445 = vmatmul.mubr.msk.bf16.vlgmr.msra.gmra.mxu1 %vm322_vm2, %v292_v30 }
  0xe8   :  { %v2989_v36 = vadd.f32 %v2183_v16, %v231_v35  ;;  %v282_v37 = vmax.f32 %v2983_v33, 0.0 }
  0xe9   :  { %v2434_v38 = vpop.f32.mrf.mxu0 }
  0xea   :  { %v280_v40 = vmax.f32 %v2989_v36, 0.0  ;;  %v2995_v42 = vadd.f32 %v2434_v38, %v2183_v16  ;;  %v294_v46 = vpack.c.bf16 %v282_v37, %v281_v41 }
  0xeb   :  { %v244_v43 = vpop.f32.mrf.mxu0 }
  0xec   :  { %v293_v44 = vpack.c.bf16 %v280_v40, %v279_v39  ;;  %v3001_v45 = vadd.f32 %v2183_v16, %v244_v43  ;;  %v285_v49 = vmax.f32 %v2995_v42, 0.0 }
  0xed   :  { %v2435_v47 = vpop.f32.mrf.mxu0 }
  0xee   :  { %v3007_v48 = vadd.f32 %v2435_v47, %v2183_v16  ;;  %2448 = vmatprep.mubr.msk.bf16.mxu1 %vm322_vm2, %v293_v44  ;;  %v283_v51 = vmax.f32 %v3001_v45, 0.0 }
  0xef   :  { %v247_v50 = vpop.f32.mrf.mxu0  ;;  %2449 = vmatmul.mubr.msk.bf16.gmra.mxu1 %vm322_vm2, %v294_v46 }
  0xf0   :  { %v286_v52 = vmax.f32 %v3007_v48, 0.0  ;;  %v3014_v53 = vadd.f32 %v2183_v16, %v247_v50 }
  0xf1   :  { %v2438_v54 = vpop.f32.mrf.mxu0 }
  0xf2   :  { %v284_v55 = vmax.f32 %v3014_v53, 0.0  ;;  %v296_v56 = vpack.c.bf16 %v286_v52, %v285_v49  ;;  %v3021_v57 = vadd.f32 %v2438_v54, %v2183_v16 }
  0xf3   :  { %v260_v58 = vpop.f32.mrf.mxu0 }
  0xf4   :  { %v295_v59 = vpack.c.bf16 %v284_v55, %v283_v51  ;;  %v3027_v60 = vadd.f32 %v2183_v16, %v260_v58  ;;  %v289_v63 = vmax.f32 %v3021_v57, 0.0  ;;  %v2712_v57 = vld [vmem:[%s3510_s9 + $0x8] sm:$0xff]  }
  0xf5   :  { %v2439_v61 = vpop.f32.mrf.mxu0 }
  0xf6   :  { %v3029_v62 = vadd.f32 %v2439_v61, %v2183_v16  ;;  %2452 = vmatprep.mubr.msk.bf16.mxu1 %vm322_vm2, %v295_v59  ;;  %v287_v1 = vmax.f32 %v3027_v60, 0.0  ;;  %v2711_v60 = vld [vmem:[%s3510_s9 + $0x10] sm:$0xff]  }
  0xf7   :  { %v263_v0 = vpop.f32.mrf.mxu0  ;;  %2453 = vmatmul.mubr.msk.bf16.gmra.mxu1 %vm322_vm2, %v296_v56 }
  0xf8   :  { %v290_v2 = vmax.f32 %v3029_v62, 0.0  ;;  %v3036_v3 = vadd.f32 %v2183_v16, %v263_v0 }
  0xfa   :  { %v288_v4 = vmax.f32 %v3036_v3, 0.0  ;;  %v298_v5 = vpack.c.bf16 %v290_v2, %v289_v63 }
  0xfc   :  { %v297_v6 = vpack.c.bf16 %v288_v4, %v287_v1 }
  0xfe   :  { %2456 = vmatprep.mubr.msk.bf16.mxu1 %vm322_vm2, %v297_v6 }
  0xff   :  { %2457 = vmatmul.mubr.msk.bf16.gmra.mxu1 %vm322_vm2, %v298_v5 }
 0x1a7   :  { %v2446_v7 = vpop.f32.mrf.mxu1 }
 0x1a8   :  { %v390_v11 = vadd.f32 %v2446_v7, %v2203_v8 }
 0x1a9   :  { %v381_v9 = vpop.f32.mrf.mxu1 }
 0x1aa   :  { %v382_v14 = vadd.f32 %v2203_v8, %v381_v9 }
 0x1ab   :  { %v2447_v10 = vpop.f32.mrf.mxu1 }
 0x1ac   :  { %v393_v12 = vadd.f32 %v2447_v10, %v2203_v8 }
 0x1ad   :  { %v384_v13 = vpop.f32.mrf.mxu1 }
 0x1ae   :  { %v3052_v15 = vpack.c.bf16 %v393_v12, %v390_v11  ;;  %v385_v16 = vadd.f32 %v2203_v8, %v384_v13 }
 0x1af   :  { %v2450_v17 = vpop.f32.mrf.mxu1 }
 0x1b0   :  { %v444_v21 = vpack.c.bf16 %v385_v16, %v382_v14  ;;  %454 = vrot.lane.b32.xlu1 %v3052_v15, %s2802_s25  ;;  %v406_v29 = vadd.f32 %v2450_v17, %v2203_v8 }
 0x1b1   :  { %v397_v24 = vpop.f32.mrf.mxu1 }
 0x1b2   :  { %2468 = vmatprep.mubr.msk.bf16.mxu1 %vm322_vm2, %v444_v21  ;;  %v398_v44 = vadd.f32 %v2203_v8, %v397_v24 }
 0x1b3   :  { %v2451_v28 = vpop.f32.mrf.mxu1 }
 0x1b4   :  { %v409_v30 = vadd.f32 %v2451_v28, %v2203_v8  ;;  %452 = vrot.lane.b32.xlu1 %v444_v21, %s2802_s25 }
 0x1b5   :  { %v400_v31 = vpop.f32.mrf.mxu1 }
 0x1b6   :  { %v3058_v35 = vpack.c.bf16 %v409_v30, %v406_v29  ;;  %v401_v38 = vadd.f32 %v2203_v8, %v400_v31 }
 0x1b7   :  { %v2454_v43 = vpop.f32.mrf.mxu1 }
 0x1b8   :  { %458 = vrot.lane.b32.xlu0 %v3058_v35, %s2802_s25  ;;  %v446_v47 = vpack.c.bf16 %v401_v38, %v398_v44  ;;  %v422_v7 = vadd.f32 %v2454_v43, %v2203_v8 }
 0x1b9   :  { %v413_v46 = vpop.f32.mrf.mxu1 }
 0x1ba   :  { %v414_v12 = vadd.f32 %v2203_v8, %v413_v46 }
 0x1bb   :  { %v2455_v50 = vpop.f32.mrf.mxu1 }
 0x1bc   :  { %456 = vrot.lane.b32.xlu0 %v446_v47, %s2802_s25  ;;  %v425_v9 = vadd.f32 %v2455_v50, %v2203_v8 }
 0x1bd   :  { %v416_v54 = vpop.f32.mrf.mxu1 }
 0x1be   :  { %v417_v13 = vadd.f32 %v2203_v8, %v416_v54  ;;  %v3069_v16 = vpack.c.bf16 %v425_v9, %v422_v7 }
 0x1bf   :  { %v2458_v56 = vpop.f32.mrf.mxu1 }
 0x1c0   :  { %v438_v59 = vadd.f32 %v2458_v56, %v2203_v8  ;;  %v3073_v17 = vpack.c.bf16 %v417_v13, %v414_v12 }
 0x1c1   :  { %v429_v58 = vpop.f32.mrf.mxu1 }
 0x1c2   :  { %v430_v0 = vadd.f32 %v2203_v8, %v429_v58 }
 0x1c3   :  { %v2459_v61 = vpop.f32.mrf.mxu1 }
 0x1c4   :  { %v441_v5 = vadd.f32 %v2459_v61, %v2203_v8 }
 0x1c5   :  { %v432_v6 = vpop.f32.mrf.mxu1 }
 0x1c6   :  { %v3063_v10 = vpack.c.bf16 %v441_v5, %v438_v59  ;;  %v433_v11 = vadd.f32 %v2203_v8, %v432_v6 }
 0x1c8   :  { %v3065_v14 = vpack.c.bf16 %v433_v11, %v430_v0  ;;  %745 = vrot.lane.b32.xlu0 %v3063_v10, %s2802_s25 }
 0x1ca   :  { %743 = vrot.lane.b32.xlu1 %v3065_v14, %s2802_s25 }
 0x1cc   :  { %741 = vrot.lane.b32.xlu0 %v3069_v16, %s2802_s25 }
 0x1ce   :  { %739 = vrot.lane.b32.xlu1 %v3073_v17, %s2802_s25 }
 0x1d0   :  { %630 = vrot.lane.b32.xlu0 %v446_v47, %s2803_s2 }
 0x1d2   :  { %632 = vrot.lane.b32.xlu1 %v3058_v35, %s2803_s2 }
 0x1d6   :  { %628 = vrot.lane.b32.xlu1 %v3052_v15, %s2803_s2 }
 0x1da   :  { %626 = vrot.lane.b32.xlu1 %v444_v21, %s2803_s2 }
 0x222   :  { %v455_v29 = vpop.permute.xlu1 %454 }
 0x223   :  { %v476_v43 = vsel %vm322_vm2, %v455_v29, 0 }
 0x226   :  { %v453_v31 = vpop.permute.xlu1 %452 }
 0x227   :  { %v473_v50 = vsel %vm322_vm2, %v453_v31, 0 }
 0x22a   :  { %v459_v8 = vpop.permute.xlu0 %458 }
 0x22b   :  { %v482_v24 = vsel %vm322_vm2, %v459_v8, 0  ;;  %2681 = vmatprep.subr.msk.bf16.mxu1 %vm322_vm2, %v459_v8 }
 0x22c   :  { %2461 = vmatpush3.bf16.xpose.msra.mxu1 %v482_v24 }
 0x22e   :  { %v457_v28 = vpop.permute.xlu0 %456 }
 0x22f   :  { %2682 = vmatprep.subr.msk.bf16.mxu1 %vm322_vm2, %v457_v28  ;;  %v479_v30 = vsel %vm322_vm2, %v457_v28, 0 }
 0x234   :  { %2463 = vmatpush3.bf16.xpose.msra.mxu1 %v479_v30 }
 0x235   :  { %2683 = vmatprep.subr.msk.bf16.mxu1 %vm322_vm2, %v455_v29 }
 0x23a   :  { %v746_v38 = vpop.permute.xlu0 %745 }
 0x23b   :  { %v769_v59 = vsel %vm322_vm2, %v746_v38, 0 }
 0x23c   :  { %2465 = vmatpush3.bf16.xpose.msra.mxu1 %v476_v43  ;;  %v744_v21 = vpop.permute.xlu1 %743 }
 0x23d   :  { %2684 = vmatprep.subr.msk.bf16.mxu1 %vm322_vm2, %v453_v31  ;;  %v766_v0 = vsel %vm322_vm2, %v744_v21, 0 }
 0x23e   :  { %v742_v44 = vpop.permute.xlu0 %741 }
 0x240   :  { %v740_v46 = vpop.permute.xlu1 %739 }
 0x242   :  { %v631_v56 = vpop.permute.xlu0 %630 }
 0x244   :  { %2467 = vmatpush3.bf16.xpose.msra.mxu1 %v473_v50  ;;  %v633_v54 = vpop.permute.xlu1 %632 }
 0x245   :  { %2476 = vmatprep.subr.bf16.mxu0 %v633_v54  ;;  %2685 = vmatprep.subr.msk.bf16.mxu1 %vm322_vm2, %v746_v38 }
 0x246   :  { %2477 = vmatpush3.bf16.msra.mxu0 %v633_v54 }
 0x247   :  { %2478 = vmatprep.subr.bf16.mxu0 %v631_v56 }
 0x248   :  { %v629_v58 = vpop.permute.xlu1 %628 }
 0x24a   :  { %2479 = vmatpush3.bf16.msra.mxu0 %v631_v56 }
 0x24b   :  { %2469 = vmatmul.mubr.msk.bf16.vlgmr.msra.gmra.mxu1 %vm322_vm2, %v3052_v15  ;;  %2480 = vmatprep.subr.bf16.mxu0 %v629_v58  ;;  %v763_v15 = vsel %vm322_vm2, %v742_v44, 0 }
 0x24c   :  { %2472 = vmatprep.mubr.msk.bf16.mxu1 %vm322_vm2, %v446_v47  ;;  %2493 = vmatpush3.bf16.xpose.msra.mxu1 %v769_v59  ;;  %v627_v61 = vpop.permute.xlu1 %626  ;;  %v760_v47 = vsel %vm322_vm2, %v740_v46, 0 }
 0x24d   :  { %2686 = vmatprep.subr.msk.bf16.mxu1 %vm322_vm2, %v744_v21 }
 0x24e   :  { %2481 = vmatpush3.bf16.msra.mxu0 %v629_v58 }
 0x24f   :  { %2482 = vmatprep.subr.bf16.mxu0 %v627_v61 }
 0x252   :  { %2483 = vmatpush3.bf16.msra.mxu0 %v627_v61 }
 0x253   :  { %2473 = vmatmul.mubr.msk.bf16.gmra.mxu1 %vm322_vm2, %v3058_v35 }
 0x254   :  { %2495 = vmatpush3.bf16.xpose.msra.mxu1 %v766_v0  ;;  %2500 = vmatprep.mubr.msk.bf16.mxu1 %vm322_vm2, %v3073_v17 }
 0x255   :  { %2687 = vmatprep.subr.msk.bf16.mxu1 %vm322_vm2, %v742_v44 }
 0x25c   :  { %2497 = vmatpush3.bf16.xpose.msra.mxu1 %v763_v15 }
 0x25d   :  { %2688 = vmatprep.subr.msk.bf16.mxu1 %vm322_vm2, %v740_v46 }
 0x264   :  { %2499 = vmatpush3.bf16.xpose.msra.mxu1 %v760_v47 }
 0x26b   :  { %2501 = vmatmul.mubr.msk.bf16.vlgmr.msra.gmra.mxu1 %vm322_vm2, %v3069_v16 }
 0x26c   :  { %2504 = vmatprep.mubr.msk.bf16.mxu1 %vm322_vm2, %v3065_v14 }
 0x273   :  { %2505 = vmatmul.mubr.msk.bf16.gmra.mxu1 %vm322_vm2, %v3063_v10 }
 0x30b   :  { %v2470_v35 = vpop.f32.mrf.mxu1 }
 0x30c   :  { %v556_v5 = vsel %vm549_vm3, %v2470_v35, -inf }
 0x30d   :  { %557 = vmax.xlane.f32.xlu0 %v556_v5  ;;  %v518_v6 = vpop.f32.mrf.mxu1 }
 0x30e   :  { %v550_v9 = vsel %vm549_vm3, %v518_v6, -inf }
 0x30f   :  { %v3115_v7 = vpop.f32.mrf.mxu1 }
 0x310   :  { %v559_v8 = vsel %vm549_vm3, %v3115_v7, -inf }
 0x311   :  { %551 = vmax.xlane.f32.xlu0 %v550_v9  ;;  %v521_v11 = vpop.f32.mrf.mxu1 }
 0x312   :  { %v553_v12 = vsel %vm549_vm3, %v521_v11, -inf }
 0x313   :  { %554 = vmax.xlane.f32.xlu1 %v553_v12  ;;  %v2474_v13 = vpop.f32.mrf.mxu1 }
 0x314   :  { %v568_v28 = vsel %vm549_vm3, %v2474_v13, -inf }
 0x315   :  { %560 = vmax.xlane.f32.xlu0 %v559_v8  ;;  %v3121_v24 = vpop.f32.mrf.mxu1 }
 0x316   :  { %v562_v38 = vsel %vm549_vm3, %v3121_v24, -inf }
 0x317   :  { %569 = vmax.xlane.f32.xlu1 %v568_v28  ;;  %v2475_v29 = vpop.f32.mrf.mxu1 }
 0x318   :  { %v571_v30 = vsel %vm549_vm3, %v2475_v29, -inf }
 0x319   :  { %572 = vmax.xlane.f32.xlu0 %v571_v30  ;;  %v537_v31 = vpop.f32.mrf.mxu1 }
 0x31a   :  { %v565_v43 = vsel %vm549_vm3, %v537_v31, -inf }
 0x31b   :  { %563 = vmax.xlane.f32.xlu1 %v562_v38 }
 0x31d   :  { %566 = vmax.xlane.f32.xlu0 %v565_v43 }
 0x32b   :  { %v3128_v21 = vpop.f32.mrf.mxu1 }
 0x32c   :  { %v842_v44 = vsel %vm549_vm3, %v3128_v21, -inf }
 0x32d   :  { %v3132_v46 = vpop.f32.mrf.mxu1  ;;  %843 = vmax.xlane.f32.xlu0 %v842_v44 }
 0x32e   :  { %v836_v50 = vsel %vm549_vm3, %v3132_v46, -inf }
 0x32f   :  { %837 = vmax.xlane.f32.xlu1 %v836_v50  ;;  %v3136_v54 = vpop.f32.mrf.mxu1 }
 0x330   :  { %v845_v56 = vsel %vm549_vm3, %v3136_v54, -inf }
 0x331   :  { %v3140_v58 = vpop.f32.mrf.mxu1  ;;  %846 = vmax.xlane.f32.xlu0 %v845_v56 }
 0x332   :  { %v839_v61 = vsel %vm549_vm3, %v3140_v58, -inf }
 0x333   :  { %v3142_v59 = vpop.f32.mrf.mxu1 }
 0x334   :  { %v854_v47 = vsel %vm549_vm3, %v3142_v59, -inf }
 0x335   :  { %v3146_v0 = vpop.f32.mrf.mxu1  ;;  %840 = vmax.xlane.f32.xlu0 %v839_v61 }
 0x336   :  { %v848_v15 = vsel %vm549_vm3, %v3146_v0, -inf }
 0x337   :  { %849 = vmax.xlane.f32.xlu1 %v848_v15  ;;  %v3152_v5 = vpop.f32.mrf.mxu1 }
 0x338   :  { %v857_v9 = vsel %vm549_vm3, %v3152_v5, -inf }
 0x339   :  { %855 = vmax.xlane.f32.xlu0 %v854_v47  ;;  %v3156_v12 = vpop.f32.mrf.mxu1 }
 0x33a   :  { %v851_v8 = vsel %vm549_vm3, %v3156_v12, -inf }
 0x33d   :  { %858 = vmax.xlane.f32.xlu0 %v857_v9 }
 0x341   :  { %852 = vmax.xlane.f32.xlu0 %v851_v8 }
 0x348   :  { %916 = vrot.lane.b32.xlu1 %v3065_v14, %s2803_s2 }
 0x34c   :  { %914 = vrot.lane.b32.xlu1 %v3069_v16, %s2803_s2 }
 0x350   :  { %912 = vrot.lane.b32.xlu1 %v3073_v17, %s2803_s2 }
 0x357   :  { %918 = vrot.lane.b32.xlu0 %v3063_v10, %s2803_s2 }
 0x396   :  { %v558_v28 = vpop.xlane.xlu0 %557 }
 0x397   :  { %v576_v30 = vsub.f32 %v2470_v35, %v558_v28 }
 0x399   :  { %v586_v44 = vmul.f32 1.442695, %v576_v30 }
 0x39a   :  { %v552_v38 = vpop.xlane.xlu0 %551 }
 0x39b   :  { %v574_v43 = vsub.f32 %v518_v6, %v552_v38 }
 0x39c   :  { %v555_v50 = vpop.xlane.xlu1 %554 }
 0x39d   :  { %v582_v56 = vmul.f32 1.442695, %v574_v43  ;;  %v575_v61 = vsub.f32 %v521_v11, %v555_v50 }
 0x39e   :  { %v561_v15 = vpop.xlane.xlu0 %560 }
 0x39f   :  { %2722 = vpow2.f32 %v582_v56  ;;  %v584_v14 = vmul.f32 1.442695, %v575_v61  ;;  %v577_v47 = vsub.f32 %v3115_v7, %v561_v15 }
 0x3a0   :  { %2724 = vpow2.f32 %v586_v44  ;;  %v570_v16 = vpop.xlane.xlu1 %569 }
 0x3a1   :  { %2726 = vpow2.f32 %v584_v14  ;;  %v588_v17 = vmul.f32 1.442695, %v577_v47  ;;  %v580_v9 = vsub.f32 %v2474_v13, %v570_v16 }
 0x3a2   :  { %v573_v8 = vpop.xlane.xlu0 %572 }
 0x3a3   :  { %2728 = vpow2.f32 %v588_v17  ;;  %v581_v10 = vsub.f32 %v2475_v29, %v573_v8  ;;  %v594_v35 = vmul.f32 1.442695, %v580_v9 }
 0x3a4   :  { %v564_v28 = vpop.xlane.xlu1 %563 }
 0x3a5   :  { %v578_v6 = vsub.f32 %v3121_v24, %v564_v28  ;;  %v596_v30 = vmul.f32 1.442695, %v581_v10  ;;  %2730 = vpow2.f32 %v594_v35 }
 0x3a6   :  { %v567_v38 = vpop.xlane.xlu0 %566 }
 0x3a7   :  { %v590_v11 = vmul.f32 1.442695, %v578_v6  ;;  %v579_v43 = vsub.f32 %v537_v31, %v567_v38 }
 0x3a9   :  { %2732 = vpow2.f32 %v590_v11  ;;  %v592_v50 = vmul.f32 1.442695, %v579_v43 }
 0x3aa   :  { %2734 = vpow2.f32 %v596_v30 }
 0x3ab   :  { %2736 = vpow2.f32 %v592_v50 }
 0x3ac   :  { %v2723_v7 = vpop.eup %2722 }
 0x3ad   :  { %v2725_v44 = vpop.eup %2724  ;;  %v598_v13 = vsel %vm549_vm3, %v2723_v7, 0.0 }
 0x3ae   :  { %v2727_v56 = vpop.eup %2726  ;;  %599 = vadd.xlane.f32.xlu1 %v598_v13  ;;  %v604_v31 = vsel %vm549_vm3, %v2725_v44, 0.0 }
 0x3af   :  { %v601_v29 = vsel %vm549_vm3, %v2727_v56, 0.0  ;;  %v622_v61 = vpack.c.bf16 %v2727_v56, %v2723_v7 }
 0x3b0   :  { %v2729_v15 = vpop.eup %2728  ;;  %602 = vadd.xlane.f32.xlu0 %v601_v29 }
 0x3b1   :  { %v623_v24 = vpack.c.bf16 %v2729_v15, %v2725_v44  ;;  %2484 = vmatprep.mubr.msk.bf16.mxu0 %vm549_vm3, %v622_v61  ;;  %v607_v14 = vsel %vm549_vm3, %v2729_v15, 0.0 }
 0x3b2   :  { %605 = vadd.xlane.f32.xlu1 %v604_v31  ;;  %v2731_v47 = vpop.eup %2730 }
 0x3b3   :  { %2485 = vmatmul.mubr.msk.bf16.vlgmr.msra.gmra.mxu0 %vm549_vm3, %v623_v24  ;;  %v616_v44 = vsel %vm549_vm3, %v2731_v47, 0.0 }
 0x3b4   :  { %608 = vadd.xlane.f32.xlu0 %v607_v14 }
 0x3b6   :  { %v2733_v16 = vpop.eup %2732  ;;  %v844_v17 = vpop.xlane.xlu0 %843 }
 0x3b7   :  { %v2735_v9 = vpop.eup %2734  ;;  %v862_v8 = vsub.f32 %v3128_v21, %v844_v17  ;;  %v610_v10 = vsel %vm549_vm3, %v2733_v16, 0.0 }
 0x3b8   :  { %v2737_v35 = vpop.eup %2736  ;;  %v838_v28 = vpop.xlane.xlu1 %837  ;;  %611 = vadd.xlane.f32.xlu1 %v610_v10  ;;  %v625_v43 = vpack.c.bf16 %v2735_v9, %v2731_v47 }
 0x3b9   :  { %v860_v6 = vsub.f32 %v3132_v46, %v838_v28  ;;  %v613_v30 = vsel %vm549_vm3, %v2737_v35, 0.0  ;;  %v624_v38 = vpack.c.bf16 %v2737_v35, %v2733_v16  ;;  %v872_v50 = vmul.f32 1.442695, %v862_v8 }
 0x3ba   :  { %614 = vadd.xlane.f32.xlu0 %v613_v30  ;;  %v847_v11 = vpop.xlane.xlu0 %846  ;;  %v619_v46 = vsel %vm549_vm3, %v2735_v9, 0.0 }
 0x3bb   :  { %v868_v7 = vmul.f32 1.442695, %v860_v6  ;;  %2488 = vmatprep.mubr.msk.bf16.mxu0 %vm549_vm3, %v624_v38  ;;  %v863_v21 = vsub.f32 %v3136_v54, %v847_v11 }
 0x3bc   :  { %617 = vadd.xlane.f32.xlu1 %v616_v44  ;;  %2489 = vmatmul.mubr.msk.bf16.gmra.mxu0 %vm549_vm3, %v625_v43 }
 0x3bd   :  { %2738 = vpow2.f32 %v868_v7  ;;  %v874_v29 = vmul.f32 1.442695, %v863_v21 }
 0x3be   :  { %620 = vadd.xlane.f32.xlu0 %v619_v46  ;;  %v841_v13 = vpop.xlane.xlu0 %840  ;;  %2740 = vpow2.f32 %v872_v50 }
 0x3bf   :  { %v861_v56 = vsub.f32 %v3140_v58, %v841_v13 }
 0x3c0   :  { %v850_v61 = vpop.xlane.xlu1 %849 }
 0x3c1   :  { %v870_v15 = vmul.f32 1.442695, %v861_v56  ;;  %v864_v24 = vsub.f32 %v3146_v0, %v850_v61 }
 0x3c2   :  { %v856_v31 = vpop.xlane.xlu0 %855 }
 0x3c3   :  { %2742 = vpow2.f32 %v870_v15  ;;  %v876_v14 = vmul.f32 1.442695, %v864_v24  ;;  %v866_v54 = vsub.f32 %v3142_v59, %v856_v31 }
 0x3c4   :  { %2744 = vpow2.f32 %v874_v29  ;;  %v917_v0 = vpop.permute.xlu1 %916 }
 0x3c5   :  { %2746 = vpow2.f32 %v876_v14  ;;  %v880_v47 = vmul.f32 1.442695, %v866_v54  ;;  %v2706_v54 = vld [vmem:[%s3508_s5 + $0x8] sm:$0xff]  }
 0x3c6   :  { %v859_v16 = vpop.xlane.xlu0 %858 }
 0x3c7   :  { %2748 = vpow2.f32 %v880_v47  ;;  %v867_v17 = vsub.f32 %v3152_v5, %v859_v16  ;;  %v2707_v47 = vld [vmem:[%s3508_s5] sm:$0xff]  }
 0x3c8   :  { %v915_v50 = vpop.permute.xlu1 %914 }
 0x3c9   :  { %v882_v28 = vmul.f32 1.442695, %v867_v17 }
 0x3ca   :  { %v2739_v9 = vpop.eup %2738  ;;  %v853_v8 = vpop.xlane.xlu0 %852 }
 0x3cb   :  { %v865_v58 = vsub.f32 %v3156_v12, %v853_v8  ;;  %v884_v10 = vsel %vm549_vm3, %v2739_v9, 0.0  ;;  %v2741_v35 = vpop.eup %2740 }
 0x3cc   :  { %885 = vadd.xlane.f32.xlu1 %v884_v10  ;;  %v890_v59 = vsel %vm549_vm3, %v2741_v35, 0.0  ;;  %v913_v13 = vpop.permute.xlu1 %912 }
 0x3cd   :  { %v878_v6 = vmul.f32 1.442695, %v865_v58 }
 0x3ce   :  { %v919_v30 = vpop.permute.xlu0 %918 }
 0x3cf   :  { %2750 = vpow2.f32 %v878_v6  ;;  %2508 = vmatprep.subr.bf16.mxu0 %v919_v30 }
 0x3d0   :  { %v2743_v38 = vpop.eup %2742  ;;  %891 = vadd.xlane.f32.xlu1 %v890_v59  ;;  %2509 = vmatpush3.bf16.msra.mxu0 %v919_v30  ;;  %2752 = vpow2.f32 %v882_v28 }
 0x3d1   :  { %v2745_v5 = vpop.eup %2744  ;;  %2510 = vmatprep.subr.bf16.mxu0 %v917_v0  ;;  %v887_v12 = vsel %vm549_vm3, %v2743_v38, 0.0  ;;  %v908_v11 = vpack.c.bf16 %v2743_v38, %v2739_v9 }
 0x3d2   :  { %v2747_v43 = vpop.eup %2746  ;;  %888 = vadd.xlane.f32.xlu0 %v887_v12  ;;  %v893_v21 = vsel %vm549_vm3, %v2745_v5, 0.0  ;;  %v909_v29 = vpack.c.bf16 %v2745_v5, %v2741_v35 }
 0x3d3   :  { %2516 = vmatprep.mubr.msk.bf16.mxu0 %vm549_vm3, %v908_v11  ;;  %v896_v7 = vsel %vm549_vm3, %v2747_v43, 0.0 }
 0x3d4   :  { %v2749_v44 = vpop.eup %2748  ;;  %897 = vadd.xlane.f32.xlu1 %v896_v7  ;;  %2511 = vmatpush3.bf16.msra.mxu0 %v917_v0 }
 0x3d5   :  { %2512 = vmatprep.subr.bf16.mxu0 %v915_v50  ;;  %v902_v46 = vsel %vm549_vm3, %v2749_v44, 0.0 }
 0x3d6   :  { %894 = vadd.xlane.f32.xlu0 %v893_v21 }
 0x3d8   :  { %903 = vadd.xlane.f32.xlu1 %v902_v46  ;;  %2513 = vmatpush3.bf16.msra.mxu0 %v915_v50 }
 0x3d9   :  { %2514 = vmatprep.subr.bf16.mxu0 %v913_v13 }
 0x3dc   :  { %v2751_v56 = vpop.eup %2750  ;;  %2515 = vmatpush3.bf16.msra.mxu0 %v913_v13 }
 0x3dd   :  { %v899_v61 = vsel %vm549_vm3, %v2751_v56, 0.0  ;;  %v910_v15 = vpack.c.bf16 %v2751_v56, %v2747_v43  ;;  %v2753_v24 = vpop.eup %2752  ;;  %2524 = vmatprep.subr.bf16.mxu0 %v2706_v54 }
 0x3de   :  { %900 = vadd.xlane.f32.xlu0 %v899_v61  ;;  %v905_v31 = vsel %vm549_vm3, %v2753_v24, 0.0  ;;  %v911_v14 = vpack.c.bf16 %v2753_v24, %v2749_v44 }
 0x3df   :  { %2517 = vmatmul.mubr.msk.bf16.vlgmr.msra.gmra.mxu0 %vm549_vm3, %v909_v29 }
 0x3e0   :  { %2520 = vmatprep.mubr.msk.bf16.mxu0 %vm549_vm3, %v910_v15  ;;  %2525 = vmatpush3.bf16.msra.mxu0 %v2706_v54 }
 0x3e1   :  { %2526 = vmatprep.subr.bf16.mxu0 %v2707_v47 }
 0x3e2   :  { %906 = vadd.xlane.f32.xlu0 %v905_v31 }
 0x3e4   :  { %2527 = vmatpush3.bf16.msra.mxu0 %v2707_v47 }
 0x3e7   :  { %2521 = vmatmul.mubr.msk.bf16.gmra.mxu0 %vm549_vm3, %v911_v14 }
 0x437   :  { %v600_v17 = vpop.xlane.xlu1 %599 }
 0x438   :  { %2754 = vrcp.f32 %v600_v17 }
 0x439   :  { %v603_v16 = vpop.xlane.xlu0 %602 }
 0x43b   :  { %v606_v8 = vpop.xlane.xlu1 %605 }
 0x43d   :  { %v609_v9 = vpop.xlane.xlu0 %608 }
 0x43e   :  { %2756 = vrcp.f32 %v609_v9 }
 0x43f   :  { %2758 = vrcp.f32 %v603_v16 }
 0x440   :  { %2760 = vrcp.f32 %v606_v8 }
 0x441   :  { %v612_v10 = vpop.xlane.xlu1 %611 }
 0x442   :  { %2762 = vrcp.f32 %v612_v10 }
 0x443   :  { %v615_v58 = vpop.xlane.xlu0 %614 }
 0x445   :  { %v618_v0 = vpop.xlane.xlu1 %617  ;;  %v2755_v30 = vpop.eup %2754 }
 0x447   :  { %v621_v35 = vpop.xlane.xlu0 %620 }
 0x448   :  { %2764 = vrcp.f32 %v621_v35 }
 0x449   :  { %2766 = vrcp.f32 %v615_v58 }
 0x44a   :  { %2768 = vrcp.f32 %v618_v0 }
 0x44b   :  { %v2757_v38 = vpop.eup %2756 }
 0x44c   :  { %v2759_v5 = vpop.eup %2758 }
 0x44d   :  { %v2761_v43 = vpop.eup %2760 }
 0x44f   :  { %v2763_v29 = vpop.eup %2762 }
 0x455   :  { %v2765_v15 = vpop.eup %2764  ;;  %v886_v58 = vpop.xlane.xlu1 %885 }
 0x456   :  { %v2767_v24 = vpop.eup %2766  ;;  %2770 = vrcp.f32 %v886_v58 }
 0x457   :  { %v2769_v54 = vpop.eup %2768 }
 0x459   :  { %v892_v35 = vpop.xlane.xlu1 %891 }
 0x45b   :  { %v889_v10 = vpop.xlane.xlu0 %888 }
 0x45f   :  { %v895_v0 = vpop.xlane.xlu0 %894 }
 0x460   :  { %2772 = vrcp.f32 %v895_v0 }
 0x461   :  { %2774 = vrcp.f32 %v889_v10 }
 0x462   :  { %2776 = vrcp.f32 %v892_v35 }
 0x473   :  { %v2486_v28 = vpop.f32.mrf.mxu0 }
 0x474   :  { %v725_v44 = vmul.f32 %v2761_v43, %v2486_v28  ;;  %v901_v28 = vpop.xlane.xlu0 %900 }
 0x475   :  { %v684_v6 = vpop.f32.mrf.mxu0 }
 0x476   :  { %v723_v50 = vmul.f32 %v2755_v30, %v684_v6  ;;  %v898_v6 = vpop.xlane.xlu1 %897 }
 0x477   :  { %v2487_v59 = vpop.f32.mrf.mxu0  ;;  %2778 = vrcp.f32 %v898_v6  ;;  %v2709_v6 = vld [vmem:[%s3509_s7] sm:$0xff]  }
 0x478   :  { %v726_v12 = vmul.f32 %v2757_v38, %v2487_v59  ;;  %v907_v30 = vpop.xlane.xlu0 %906 }
 0x479   :  { %v687_v11 = vpop.f32.mrf.mxu0  ;;  %2780 = vrcp.f32 %v907_v30  ;;  %v2710_v30 = vld [vmem:[%s3510_s9 + $0x18] sm:$0xff]  }
 0x47a   :  { %v724_v7 = vmul.f32 %v2759_v5, %v687_v11  ;;  %v1018_v13 = vpack.c.bf16 %v726_v12, %v725_v44  ;;  %v904_v59 = vpop.xlane.xlu1 %903  ;;  %2782 = vrcp.f32 %v901_v28  ;;  %v2771_v12 = vpop.eup %2770  ;;  %v2708_v28 = vld [vmem:[%s3509_s7 + $0x8] sm:$0xff]   ;;  %2564 = vmatprep.subr.bf16.mxu0 %v2710_v30 }
 0x47b   :  { %2784 = vrcp.f32 %v904_v59  ;;  %v2773_v43 = vpop.eup %2772  ;;  %2544 = vmatprep.subr.bf16.mxu1 %v2708_v28 }
 0x47c   :  { %v1017_v21 = vpack.c.bf16 %v724_v7, %v723_v50  ;;  %v2490_v46 = vpop.f32.mrf.mxu0  ;;  %v2775_v50 = vpop.eup %2774  ;;  %2545 = vmatpush3.bf16.msra.mxu1 %v2708_v28 }
 0x47d   :  { %v729_v17 = vmul.f32 %v2769_v54, %v2490_v46  ;;  %2546 = vmatprep.subr.bf16.mxu1 %v2709_v6 }
 0x47e   :  { %v700_v56 = vpop.f32.mrf.mxu0  ;;  %2528 = vmatprep.mubr.msk.bf16.mxu0 %vm322_vm2, %v1017_v21  ;;  %v2777_v21 = vpop.eup %2776 }
 0x47f   :  { %2529 = vmatmul.mubr.msk.bf16.vlgmr.msra.gmra.mxu0 %vm322_vm2, %v1018_v13  ;;  %v727_v47 = vmul.f32 %v2763_v29, %v700_v56 }
 0x480   :  { %v2491_v61 = vpop.f32.mrf.mxu0  ;;  %2547 = vmatpush3.bf16.msra.mxu1 %v2709_v6  ;;  %2565 = vmatpush3.bf16.msra.mxu0 %v2710_v30 }
 0x481   :  { %v730_v31 = vmul.f32 %v2765_v15, %v2491_v61  ;;  %2566 = vmatprep.subr.bf16.mxu0 %v2711_v60 }
 0x482   :  { %v703_v14 = vpop.f32.mrf.mxu0 }
 0x483   :  { %v728_v16 = vmul.f32 %v2767_v24, %v703_v14  ;;  %v1020_v8 = vpack.c.bf16 %v730_v31, %v729_v17 }
 0x484   :  { %v2779_v31 = vpop.eup %2778  ;;  %2567 = vmatpush3.bf16.msra.mxu0 %v2711_v60 }
 0x485   :  { %v1019_v9 = vpack.c.bf16 %v728_v16, %v727_v47  ;;  %2568 = vmatprep.subr.bf16.mxu0 %v2712_v57 }
 0x486   :  { %v2781_v54 = vpop.eup %2780 }
 0x487   :  { %2532 = vmatprep.mubr.msk.bf16.mxu0 %vm322_vm2, %v1019_v9  ;;  %v2783_v47 = vpop.eup %2782 }
 0x488   :  { %2533 = vmatmul.mubr.msk.bf16.gmra.mxu0 %vm322_vm2, %v1020_v8  ;;  %v2785_v9 = vpop.eup %2784 }
 0x489   :  { %2569 = vmatpush3.bf16.msra.mxu0 %v2712_v57 }
 0x49f   :  { %v2518_v38 = vpop.f32.mrf.mxu0 }
 0x4a0   :  { %v1011_v56 = vmul.f32 %v2777_v21, %v2518_v38 }
 0x4a1   :  { %v970_v5 = vpop.f32.mrf.mxu0 }
 0x4a2   :  { %v1009_v46 = vmul.f32 %v2771_v12, %v970_v5  ;;  %v2230_v5 = vld [vmem:[%s3511_s6] ss:$0 sm:$0xff] }
 0x4a3   :  { %v2519_v11 = vpop.f32.mrf.mxu0 }
 0x4a4   :  { %v1012_v7 = vmul.f32 %v2773_v43, %v2519_v11 }
 0x4a5   :  { %v973_v44 = vpop.f32.mrf.mxu0 }
 0x4a6   :  { %v1010_v13 = vmul.f32 %v2775_v50, %v973_v44  ;;  %v1022_v15 = vpack.c.bf16 %v1012_v7, %v1011_v56 }
 0x4a7   :  { %v2522_v29 = vpop.f32.mrf.mxu0 }
 0x4a8   :  { %v1021_v61 = vpack.c.bf16 %v1010_v13, %v1009_v46  ;;  %v1015_v10 = vmul.f32 %v2785_v9, %v2522_v29 }
 0x4a9   :  { %v986_v24 = vpop.f32.mrf.mxu0 }
 0x4aa   :  { %2536 = vmatprep.mubr.msk.bf16.mxu0 %vm322_vm2, %v1021_v61  ;;  %v1013_v8 = vmul.f32 %v2779_v31, %v986_v24 }
 0x4ab   :  { %v2523_v14 = vpop.f32.mrf.mxu0  ;;  %2537 = vmatmul.mubr.msk.bf16.gmra.mxu0 %vm322_vm2, %v1022_v15 }
 0x4ac   :  { %v1016_v16 = vmul.f32 %v2781_v54, %v2523_v14 }
 0x4ad   :  { %v989_v17 = vpop.f32.mrf.mxu0 }
 0x4ae   :  { %v1014_v58 = vmul.f32 %v2783_v47, %v989_v17  ;;  %v1024_v0 = vpack.c.bf16 %v1016_v16, %v1015_v10 }
 0x4b0   :  { %v1023_v35 = vpack.c.bf16 %v1014_v58, %v1013_v8 }
 0x4b2   :  { %2540 = vmatprep.mubr.msk.bf16.mxu0 %vm322_vm2, %v1023_v35 }
 0x4b3   :  { %2541 = vmatmul.mubr.msk.bf16.gmra.mxu0 %vm322_vm2, %v1024_v0 }
 0x53f   :  { %v2530_v59 = vpop.f32.mrf.mxu0 }
 0x540   :  { %v1115_v50 = vadd.f32 %v2530_v59, %v2230_v5  ;;  %v2241_v59 = vld [vmem:[%s3513_s8] ss:$0 sm:$0xff] }
 0x541   :  { %v1106_v38 = vpop.f32.mrf.mxu0 }
 0x542   :  { %v1107_v11 = vadd.f32 %v2230_v5, %v1106_v38  ;;  %v3242_v29 = vadd.f32 %v1115_v50, %v277_v27 }
 0x543   :  { %v2531_v12 = vpop.f32.mrf.mxu0 }
 0x544   :  { %v1118_v43 = vadd.f32 %v2531_v12, %v2230_v5  ;;  %v3234_v46 = vadd.f32 %v1107_v11, %v275_v25 }
 0x545   :  { %v1109_v7 = vpop.f32.mrf.mxu0 }
 0x546   :  { %v1110_v44 = vadd.f32 %v2230_v5, %v1109_v7  ;;  %v3230_v21 = vadd.f32 %v1118_v43, %v278_v23 }
 0x548   :  { %v3238_v13 = vadd.f32 %v1110_v44, %v276_v26  ;;  %v2534_v56 = vpop.f32.mrf.mxu0  ;;  %v1186_v19 = vpack.c.bf16 %v3230_v21, %v3242_v29 }
 0x549   :  { %v1131_v22 = vadd.f32 %v2534_v56, %v2230_v5 }
 0x54a   :  { %v1185_v61 = vpack.c.bf16 %v3238_v13, %v3234_v46  ;;  %v1122_v15 = vpop.f32.mrf.mxu0 }
 0x54b   :  { %v1123_v18 = vadd.f32 %v2230_v5, %v1122_v15  ;;  %v3264_v14 = vadd.f32 %v1131_v22, %v281_v41 }
 0x54c   :  { %v2535_v23 = vpop.f32.mrf.mxu0  ;;  %2548 = vmatprep.mubr.msk.bf16.mxu1 %vm322_vm2, %v1185_v61 }
 0x54d   :  { %v1134_v25 = vadd.f32 %v2535_v23, %v2230_v5  ;;  %2549 = vmatmul.mubr.msk.bf16.vlgmr.msra.gmra.mxu1 %vm322_vm2, %v1186_v19  ;;  %v3256_v27 = vadd.f32 %v1123_v18, %v279_v39 }
 0x54e   :  { %v1125_v26 = vpop.f32.mrf.mxu0 }
 0x54f   :  { %v1126_v24 = vadd.f32 %v2230_v5, %v1125_v26  ;;  %v3252_v20 = vadd.f32 %v1134_v25, %v282_v37 }
 0x551   :  { %v3260_v31 = vadd.f32 %v1126_v24, %v280_v40  ;;  %v1188_v33 = vpack.c.bf16 %v3252_v20, %v3264_v14 }
 0x553   :  { %v1187_v54 = vpack.c.bf16 %v3260_v31, %v3256_v27 }
 0x555   :  { %2552 = vmatprep.mubr.msk.bf16.mxu1 %vm322_vm2, %v1187_v54 }
 0x556   :  { %2553 = vmatmul.mubr.msk.bf16.gmra.mxu1 %vm322_vm2, %v1188_v33 }
 0x56b   :  { %v2538_v32 = vpop.f32.mrf.mxu0 }
 0x56c   :  { %v1147_v47 = vadd.f32 %v2538_v32, %v2230_v5 }
 0x56d   :  { %v1138_v37 = vpop.f32.mrf.mxu0 }
 0x56e   :  { %v1139_v36 = vadd.f32 %v2230_v5, %v1138_v37  ;;  %v3286_v58 = vadd.f32 %v1147_v47, %v285_v49 }
 0x56f   :  { %v2539_v39 = vpop.f32.mrf.mxu0 }
 0x570   :  { %v1150_v40 = vadd.f32 %v2539_v39, %v2230_v5  ;;  %v3278_v9 = vadd.f32 %v1139_v36, %v283_v51 }
 0x571   :  { %v1141_v16 = vpop.f32.mrf.mxu0 }
 0x572   :  { %v1142_v34 = vadd.f32 %v2230_v5, %v1141_v16  ;;  %v3274_v41 = vadd.f32 %v1150_v40, %v286_v52 }
 0x573   :  { %v2542_v17 = vpop.f32.mrf.mxu0 }
 0x574   :  { %v3282_v8 = vadd.f32 %v1142_v34, %v284_v55  ;;  %v1190_v48 = vpack.c.bf16 %v3274_v41, %v3286_v58  ;;  %v1163_v51 = vadd.f32 %v2542_v17, %v2230_v5 }
 0x575   :  { %v1154_v10 = vpop.f32.mrf.mxu0 }
 0x576   :  { %v1189_v35 = vpack.c.bf16 %v3282_v8, %v3278_v9  ;;  %v1155_v0 = vadd.f32 %v2230_v5, %v1154_v10  ;;  %v3308_v6 = vadd.f32 %v1163_v51, %v289_v63  ;;  %v2713_v63 = vld [vmem:[%s3510_s9] sm:$0xff]  }
 0x577   :  { %v2543_v52 = vpop.f32.mrf.mxu0  ;;  %2570 = vmatprep.subr.bf16.mxu0 %v2713_v63 }
 0x578   :  { %v1166_v45 = vadd.f32 %v2543_v52, %v2230_v5  ;;  %2556 = vmatprep.mubr.msk.bf16.mxu1 %vm322_vm2, %v1189_v35  ;;  %v3300_v49 = vadd.f32 %v1155_v0, %v287_v1  ;;  %2571 = vmatpush3.bf16.msra.mxu0 %v2713_v63  ;;  %v2804_v1 = vmov 0.0  }
 0x579   :  { %v1157_v53 = vpop.f32.mrf.mxu0  ;;  %2557 = vmatmul.mubr.msk.bf16.gmra.mxu1 %vm322_vm2, %v1190_v48  ;;  %2588 = vmatprep.subr.bf16.mxu1 %v2804_v1 }
 0x57a   :  { %v1158_v55 = vadd.f32 %v2230_v5, %v1157_v53  ;;  %v3296_v42 = vadd.f32 %v1166_v45, %v290_v2  ;;  %v2714_v2 = vld [vmem:[%s3512_s12 + $0x8] sm:$0xff]   ;;  %2616 = vmatprep.subr.bf16.mxu0 %v2804_v1 }
 0x57b   :  { %2589 = vmatpush3.bf16.msra.mxu1 %v2714_v2 }
 0x57c   :  { %v3304_v28 = vadd.f32 %v1158_v55, %v288_v4  ;;  %v1192_v62 = vpack.c.bf16 %v3296_v42, %v3308_v6  ;;  %2590 = vmatprep.subr.bf16.mxu1 %v2804_v1 }
 0x57e   :  { %v1191_v30 = vpack.c.bf16 %v3304_v28, %v3300_v49 }
 0x580   :  { %2560 = vmatprep.mubr.msk.bf16.mxu1 %vm322_vm2, %v1191_v30 }
 0x581   :  { %2561 = vmatmul.mubr.msk.bf16.gmra.mxu1 %vm322_vm2, %v1192_v62 }
 0x582   :  { %2592 = vmatprep.mubr.msk.bf16.mxu1 %vm2805_vm4, %v2804_v1 }
 0x60d   :  { %v2550_v3 = vpop.f32.mrf.mxu1 }
 0x60e   :  { %v1283_v11 = vadd.f32 %v2550_v3, %v2241_v59 }
 0x60f   :  { %v1274_v4 = vpop.f32.mrf.mxu1 }
 0x610   :  { %v1275_v5 = vadd.f32 %v2241_v59, %v1274_v4  ;;  %v1339_v15 = vmax.f32 %v1283_v11, 0.0 }
 0x611   :  { %v2551_v38 = vpop.f32.mrf.mxu1 }
 0x612   :  { %v1286_v12 = vadd.f32 %v2551_v38, %v2241_v59  ;;  %v1337_v44 = vmax.f32 %v1275_v5, 0.0 }
 0x613   :  { %v1277_v43 = vpop.f32.mrf.mxu1 }
 0x614   :  { %v1278_v50 = vadd.f32 %v2241_v59, %v1277_v43  ;;  %v1340_v7 = vmax.f32 %v1286_v12, 0.0 }
 0x616   :  { %v1338_v56 = vmax.f32 %v1278_v50, 0.0  ;;  %v2554_v61 = vpop.f32.mrf.mxu1  ;;  %v1354_v18 = vpack.c.bf16 %v1340_v7, %v1339_v15 }
 0x617   :  { %v1299_v24 = vadd.f32 %v2554_v61, %v2241_v59  ;;  %v3348_v61 = vld [vmem:[%s3514_s11] sm:$0xff] }
 0x618   :  { %v1353_v19 = vpack.c.bf16 %v1338_v56, %v1337_v44  ;;  %v1290_v23 = vpop.f32.mrf.mxu1  ;;  %v2715_v56 = vld [vmem:[%s3512_s12] sm:$0xff]  }
 0x619   :  { %v1291_v22 = vadd.f32 %v2241_v59, %v1290_v23  ;;  %v1343_v36 = vmax.f32 %v1299_v24, 0.0  ;;  %2591 = vmatpush3.bf16.msra.mxu1 %v2715_v56  ;;  %v2717_v23 = vld [vmem:[%s3515_s14] sm:$0xff]  }
 0x61a   :  { %v2555_v25 = vpop.f32.mrf.mxu1  ;;  %2572 = vmatprep.mubr.msk.bf16.mxu0 %vm549_vm3, %v1353_v19  ;;  %v2716_v19 = vld [vmem:[%s3515_s14 + $0x8] sm:$0xff]  }
 0x61b   :  { %v1302_v26 = vadd.f32 %v2555_v25, %v2241_v59  ;;  %2573 = vmatmul.mubr.msk.bf16.vlgmr.msra.gmra.mxu0 %vm549_vm3, %v1354_v18  ;;  %v1341_v37 = vmax.f32 %v1291_v22, 0.0  ;;  %2596 = vmatprep.subr.bf16.mxu1 %v2716_v19  ;;  %v2252_v22 = vld [vmem:[%s3516_s10] ss:$0 sm:$0xff] }
 0x61c   :  { %v1293_v54 = vpop.f32.mrf.mxu1 }
 0x61d   :  { %v1294_v33 = vadd.f32 %v2241_v59, %v1293_v54  ;;  %v1344_v32 = vmax.f32 %v1302_v26, 0.0 }
 0x61f   :  { %v1342_v39 = vmax.f32 %v1294_v33, 0.0  ;;  %v1356_v47 = vpack.c.bf16 %v1344_v32, %v1343_v36 }
 0x621   :  { %v1355_v40 = vpack.c.bf16 %v1342_v39, %v1341_v37 }
 0x623   :  { %2576 = vmatprep.mubr.msk.bf16.mxu0 %vm549_vm3, %v1355_v40 }
 0x624   :  { %2577 = vmatmul.mubr.msk.bf16.gmra.mxu0 %vm549_vm3, %v1356_v47 }
 0x639   :  { %v2558_v16 = vpop.f32.mrf.mxu1 }
 0x63a   :  { %v1315_v48 = vadd.f32 %v2558_v16, %v2241_v59 }
 0x63b   :  { %v1306_v34 = vpop.f32.mrf.mxu1 }
 0x63c   :  { %v1307_v10 = vadd.f32 %v2241_v59, %v1306_v34  ;;  %v1347_v30 = vmax.f32 %v1315_v48, 0.0 }
 0x63d   :  { %v2559_v17 = vpop.f32.mrf.mxu1 }
 0x63e   :  { %v1318_v35 = vadd.f32 %v2559_v17, %v2241_v59  ;;  %v1345_v53 = vmax.f32 %v1307_v10, 0.0 }
 0x63f   :  { %v1309_v52 = vpop.f32.mrf.mxu1 }
 0x640   :  { %v1310_v0 = vadd.f32 %v2241_v59, %v1309_v52  ;;  %v1348_v45 = vmax.f32 %v1318_v35, 0.0 }
 0x641   :  { %v2562_v51 = vpop.f32.mrf.mxu1 }
 0x642   :  { %v1346_v55 = vmax.f32 %v1310_v0, 0.0  ;;  %v1358_v57 = vpack.c.bf16 %v1348_v45, %v1347_v30  ;;  %v1331_v4 = vadd.f32 %v2562_v51, %v2241_v59 }
 0x643   :  { %v1322_v62 = vpop.f32.mrf.mxu1 }
 0x644   :  { %v1357_v60 = vpack.c.bf16 %v1346_v55, %v1345_v53  ;;  %v1323_v2 = vadd.f32 %v2241_v59, %v1322_v62  ;;  %v1351_v50 = vmax.f32 %v1331_v4, 0.0 }
 0x645   :  { %v2563_v63 = vpop.f32.mrf.mxu1 }
 0x646   :  { %v1334_v3 = vadd.f32 %v2563_v63, %v2241_v59  ;;  %2580 = vmatprep.mubr.msk.bf16.mxu0 %vm549_vm3, %v1357_v60  ;;  %v1349_v11 = vmax.f32 %v1323_v2, 0.0 }
 0x647   :  { %v1325_v38 = vpop.f32.mrf.mxu1  ;;  %2581 = vmatmul.mubr.msk.bf16.gmra.mxu0 %vm549_vm3, %v1358_v57 }
 0x648   :  { %v1326_v5 = vadd.f32 %v2241_v59, %v1325_v38  ;;  %v1352_v12 = vmax.f32 %v1334_v3, 0.0  ;;  %v3353_v59 = vld [vmem:[%s3514_s11 + $0x8] sm:$0xff] }
 0x649   :  { %v1539_v15 = vpack.c.bf16 %v3353_v59, %v3348_v61 }
 0x64a   :  { %v1350_v43 = vmax.f32 %v1326_v5, 0.0  ;;  %v1360_v44 = vpack.c.bf16 %v1352_v12, %v1351_v50 }
 0x64b   :  { %2593 = vmatmul.mubr.msk.bf16.vlgmr.msra.gmra.mxu1 %vm322_vm2, %v1539_v15 }
 0x64c   :  { %v1359_v7 = vpack.c.bf16 %v1350_v43, %v1349_v11  ;;  %2597 = vmatpush3.bf16.msra.mxu1 %v2716_v19 }
 0x64d   :  { %2598 = vmatprep.subr.bf16.mxu1 %v2717_v23 }
 0x64e   :  { %2584 = vmatprep.mubr.msk.bf16.mxu0 %vm549_vm3, %v1359_v7 }
 0x64f   :  { %2585 = vmatmul.mubr.msk.bf16.gmra.mxu0 %vm549_vm3, %v1360_v44 }
 0x650   :  { %2624 = vmatprep.mubr.msk.bf16.mxu0 %vm2805_vm4, %v2804_v1  ;;  %2599 = vmatpush3.bf16.msra.mxu1 %v2717_v23 }
 0x651   :  { %2640 = vmatprep.subr.bf16.mxu1 %v2804_v1 }
 0x6db   :  { %v2574_v18 = vpop.f32.mrf.mxu0 }
 0x6dc   :  { %v1467_v33 = vadd.f32 %v2574_v18, %v2252_v22 }
 0x6dd   :  { %v1458_v25 = vpop.f32.mrf.mxu0 }
 0x6de   :  { %v1459_v24 = vadd.f32 %v2252_v22, %v1458_v25  ;;  %v1523_v16 = vadd.f32 %v1467_v33, %v3242_v29 }
 0x6df   :  { %v2575_v26 = vpop.f32.mrf.mxu0 }
 0x6e0   :  { %v1470_v54 = vadd.f32 %v2575_v26, %v2252_v22  ;;  %v1521_v36 = vadd.f32 %v1459_v24, %v3234_v46 }
 0x6e1   :  { %v1461_v32 = vpop.f32.mrf.mxu0 }
 0x6e2   :  { %v1462_v37 = vadd.f32 %v2252_v22, %v1461_v32  ;;  %v1524_v39 = vadd.f32 %v1470_v54, %v3230_v21 }
 0x6e4   :  { %v1522_v40 = vadd.f32 %v1462_v37, %v3238_v13  ;;  %v2578_v47 = vpop.f32.mrf.mxu0  ;;  %v1608_v10 = vpack.c.bf16 %v1524_v39, %v1523_v16 }
 0x6e5   :  { %v1483_v0 = vadd.f32 %v2578_v47, %v2252_v22 }
 0x6e6   :  { %v1607_v34 = vpack.c.bf16 %v1522_v40, %v1521_v36  ;;  %v1474_v17 = vpop.f32.mrf.mxu0 }
 0x6e7   :  { %v1475_v48 = vadd.f32 %v2252_v22, %v1474_v17  ;;  %v1527_v29 = vadd.f32 %v1483_v0, %v3264_v14 }
 0x6e8   :  { %v2579_v35 = vpop.f32.mrf.mxu0  ;;  %2600 = vmatprep.mubr.msk.bf16.mxu1 %vm322_vm2, %v1607_v34 }
 0x6e9   :  { %v1486_v52 = vadd.f32 %v2579_v35, %v2252_v22  ;;  %2601 = vmatmul.mubr.msk.bf16.vlgmr.msra.gmra.mxu1 %vm322_vm2, %v1608_v10  ;;  %v1525_v13 = vadd.f32 %v1475_v48, %v3256_v27 }
 0x6ea   :  { %v1477_v45 = vpop.f32.mrf.mxu0 }
 0x6eb   :  { %v1478_v21 = vadd.f32 %v2252_v22, %v1477_v45  ;;  %v1528_v46 = vadd.f32 %v1486_v52, %v3252_v20 }
 0x6ed   :  { %v1526_v51 = vadd.f32 %v1478_v21, %v3260_v31  ;;  %v1610_v55 = vpack.c.bf16 %v1528_v46, %v1527_v29 }
 0x6ef   :  { %v1609_v53 = vpack.c.bf16 %v1526_v51, %v1525_v13  ;;  %v2265_v13 = vld [vmem:[%s3518_s13] ss:$0 sm:$0xff] }
 0x6f1   :  { %2604 = vmatprep.mubr.msk.bf16.mxu1 %vm322_vm2, %v1609_v53 }
 0x6f2   :  { %2605 = vmatmul.mubr.msk.bf16.gmra.mxu1 %vm322_vm2, %v1610_v55 }
 0x707   :  { %v2582_v30 = vpop.f32.mrf.mxu0 }
 0x708   :  { %v1499_v2 = vadd.f32 %v2582_v30, %v2252_v22 }
 0x709   :  { %v1490_v62 = vpop.f32.mrf.mxu0 }
 0x70a   :  { %v1491_v57 = vadd.f32 %v2252_v22, %v1490_v62  ;;  %v1531_v38 = vadd.f32 %v1499_v2, %v3286_v58 }
 0x70b   :  { %v2583_v60 = vpop.f32.mrf.mxu0  ;;  %v1600_v18 = vpop.f32.mrf.mxu1 }
 0x70c   :  { %v1502_v63 = vadd.f32 %v2583_v60, %v2252_v22  ;;  %v1529_v31 = vadd.f32 %v1491_v57, %v3278_v9  ;;  %v1601_v29 = vadd.f32 %v2265_v13, %v1600_v18 }
 0x70d   :  { %v1493_v3 = vpop.f32.mrf.mxu0  ;;  %v2594_v25 = vpop.f32.mrf.mxu1 }
 0x70e   :  { %v1494_v20 = vadd.f32 %v2252_v22, %v1493_v3  ;;  %v1532_v27 = vadd.f32 %v1502_v63, %v3274_v41  ;;  %v1759_v30 = vpack.c.bf16 %v1601_v29, %v1601_v29 }
 0x70f   :  { %v2586_v4 = vpop.f32.mrf.mxu0 }
 0x710   :  { %v1530_v14 = vadd.f32 %v1494_v20, %v3282_v8  ;;  %v1612_v11 = vpack.c.bf16 %v1532_v27, %v1531_v38  ;;  %v1515_v44 = vadd.f32 %v2586_v4, %v2252_v22 }
 0x711   :  { %v1506_v5 = vpop.f32.mrf.mxu0 }
 0x712   :  { %v1611_v12 = vpack.c.bf16 %v1530_v14, %v1529_v31  ;;  %v1507_v50 = vadd.f32 %v2252_v22, %v1506_v5  ;;  %v1535_v58 = vadd.f32 %v1515_v44, %v3308_v6 }
 0x713   :  { %v2587_v43 = vpop.f32.mrf.mxu0 }
 0x714   :  { %v1518_v7 = vadd.f32 %v2587_v43, %v2252_v22  ;;  %2608 = vmatprep.mubr.msk.bf16.mxu1 %vm322_vm2, %v1611_v12  ;;  %v1533_v9 = vadd.f32 %v1507_v50, %v3300_v49  ;;  %v3403_v49 = vld [vmem:[%s3517_s15] ss:$0 sm:$0xff] }
 0x715   :  { %v1509_v56 = vpop.f32.mrf.mxu0  ;;  %2609 = vmatmul.mubr.msk.bf16.gmra.mxu1 %vm322_vm2, %v1612_v11 }
 0x716   :  { %v1510_v41 = vadd.f32 %v2252_v22, %v1509_v56  ;;  %v1536_v15 = vadd.f32 %v1518_v7, %v3296_v42  ;;  %v3398_v22 = vpop.f32.mrf.mxu1 }
 0x718   :  { %v1534_v8 = vadd.f32 %v1510_v41, %v3304_v28  ;;  %v1614_v23 = vpack.c.bf16 %v1536_v15, %v1535_v58  ;;  %v2595_v42 = vpop.f32.mrf.mxu1 }
 0x71a   :  { %v1613_v19 = vpack.c.bf16 %v1534_v8, %v1533_v9  ;;  %v1604_v9 = vadd.f32 %v2265_v13, %v3398_v22  ;;  %v2719_v13 = vld [vmem:[%s3519_s16] sm:$0xff]  }
 0x71c   :  { %2612 = vmatprep.mubr.msk.bf16.mxu1 %vm322_vm2, %v1613_v19  ;;  %v1890_v8 = vpack.c.bf16 %v1604_v9, %v1604_v9 }
 0x71d   :  { %2613 = vmatmul.mubr.msk.bf16.gmra.mxu1 %vm322_vm2, %v1614_v23 }
 0x71e   :  { %2648 = vmatprep.mubr.msk.bf16.mxu1 %vm2805_vm4, %v2804_v1 }
 0x7a9   :  { %v2602_v26 = vpop.f32.mrf.mxu1 }
 0x7aa   :  { %v1705_v24 = vadd.f32 %v2602_v26, %v3403_v49 }
 0x7ab   :  { %v1696_v28 = vpop.f32.mrf.mxu1 }
 0x7ac   :  { %v1697_v39 = vadd.f32 %v3403_v49, %v1696_v28 }
 0x7ad   :  { %v2603_v6 = vpop.f32.mrf.mxu1 }
 0x7ae   :  { %v1708_v54 = vadd.f32 %v2603_v6, %v3403_v49 }
 0x7af   :  { %v1699_v33 = vpop.f32.mrf.mxu1 }
 0x7b0   :  { %v1761_v32 = vpack.c.bf16 %v1708_v54, %v1705_v24  ;;  %v1700_v37 = vadd.f32 %v3403_v49, %v1699_v33 }
 0x7b2   :  { %1835 = vrot.lane.b32.xlu1 %v1761_v32, %s2802_s25  ;;  %v2606_v36 = vpop.f32.mrf.mxu1  ;;  %v1760_v40 = vpack.c.bf16 %v1700_v37, %v1697_v39  ;;  %v1771_v46 = vsel %vm322_vm2, %v1761_v32, 0 }
 0x7b3   :  { %v1721_v34 = vadd.f32 %v2606_v36, %v3403_v49 }
 0x7b4   :  { %v1712_v47 = vpop.f32.mrf.mxu1  ;;  %v1768_v51 = vsel %vm322_vm2, %v1760_v40, 0 }
 0x7b5   :  { %v1713_v35 = vadd.f32 %v3403_v49, %v1712_v47 }
 0x7b6   :  { %v2607_v16 = vpop.f32.mrf.mxu1  ;;  %1833 = vrot.lane.b32.xlu1 %v1760_v40, %s2802_s25 }
 0x7b7   :  { %v1724_v17 = vadd.f32 %v2607_v16, %v3403_v49 }
 0x7b8   :  { %v1715_v10 = vpop.f32.mrf.mxu1 }
 0x7b9   :  { %v1763_v48 = vpack.c.bf16 %v1724_v17, %v1721_v34  ;;  %v1716_v52 = vadd.f32 %v3403_v49, %v1715_v10 }
 0x7bb   :  { %v1762_v0 = vpack.c.bf16 %v1716_v52, %v1713_v35  ;;  %1839 = vrot.lane.b32.xlu1 %v1763_v48, %s2802_s25  ;;  %v1777_v45 = vsel %vm322_vm2, %v1763_v48, 0 }
 0x7bc   :  { %2617 = vmatpush3.bf16.xpose.msra.mxu0 %v1777_v45 }
 0x7bd   :  { %1837 = vrot.lane.b32.xlu0 %v1762_v0, %s2802_s25  ;;  %2618 = vmatprep.subr.bf16.mxu0 %v2804_v1  ;;  %v1774_v21 = vsel %vm322_vm2, %v1762_v0, 0 }
 0x7c4   :  { %2619 = vmatpush3.bf16.xpose.msra.mxu0 %v1774_v21 }
 0x7c5   :  { %2620 = vmatprep.subr.bf16.mxu0 %v2804_v1 }
 0x7cc   :  { %2621 = vmatpush3.bf16.xpose.msra.mxu0 %v1771_v46  ;;  %v2718_v46 = vld [vmem:[%s3519_s16 + $0x8] sm:$0xff]  }
 0x7cd   :  { %2622 = vmatprep.subr.bf16.mxu0 %v2804_v1 }
 0x7d4   :  { %2623 = vmatpush3.bf16.xpose.msra.mxu0 %v1768_v51 }
 0x7d5   :  { %v2610_v53 = vpop.f32.mrf.mxu1  ;;  %2628 = vmatprep.subr.bf16.mxu0 %v2804_v1 }
 0x7d6   :  { %v1737_v43 = vadd.f32 %v2610_v53, %v3403_v49 }
 0x7d7   :  { %v1728_v55 = vpop.f32.mrf.mxu1 }
 0x7d8   :  { %v1729_v56 = vadd.f32 %v3403_v49, %v1728_v55 }
 0x7d9   :  { %v2611_v62 = vpop.f32.mrf.mxu1 }
 0x7da   :  { %v1740_v12 = vadd.f32 %v2611_v62, %v3403_v49 }
 0x7db   :  { %v1731_v60 = vpop.f32.mrf.mxu1  ;;  %2625 = vmatmul.mubr.msk.bf16.vlgmr.msra.gmra.mxu0 %vm322_vm2, %v1759_v30 }
 0x7dc   :  { %2636 = vmatprep.mubr.msk.bf16.mxu0 %vm2805_vm4, %v2804_v1  ;;  %v1892_v50 = vpack.c.bf16 %v1740_v12, %v1737_v43  ;;  %v1732_v7 = vadd.f32 %v3403_v49, %v1731_v60 }
 0x7dd   :  { %v2614_v57 = vpop.f32.mrf.mxu1 }
 0x7de   :  { %v1753_v3 = vadd.f32 %v2614_v57, %v3403_v49  ;;  %v1902_v44 = vsel %vm322_vm2, %v1892_v50, 0  ;;  %v1891_v41 = vpack.c.bf16 %v1732_v7, %v1729_v56 }
 0x7df   :  { %v1744_v63 = vpop.f32.mrf.mxu1 }
 0x7e0   :  { %v1745_v38 = vadd.f32 %v3403_v49, %v1744_v63  ;;  %v1899_v15 = vsel %vm322_vm2, %v1891_v41, 0 }
 0x7e1   :  { %v2615_v2 = vpop.f32.mrf.mxu1 }
 0x7e2   :  { %v1756_v20 = vadd.f32 %v2615_v2, %v3403_v49 }
 0x7e3   :  { %v1747_v27 = vpop.f32.mrf.mxu1 }
 0x7e4   :  { %v1894_v4 = vpack.c.bf16 %v1756_v20, %v1753_v3  ;;  %v1748_v31 = vadd.f32 %v3403_v49, %v1747_v27 }
 0x7e6   :  { %1970 = vrot.lane.b32.xlu0 %v1894_v4, %s2802_s25  ;;  %v1908_v14 = vsel %vm322_vm2, %v1894_v4, 0  ;;  %v1893_v5 = vpack.c.bf16 %v1748_v31, %v1745_v38  ;;  %v2721_v38 = vld [vmem:[%s3520_s18] sm:$0xff]  }
 0x7e7   :  { %2641 = vmatpush3.bf16.xpose.msra.mxu1 %v1908_v14  ;;  %v2720_v14 = vld [vmem:[%s3520_s18 + $0x8] sm:$0xff]  }
 0x7e8   :  { %2642 = vmatprep.subr.bf16.mxu1 %v2804_v1  ;;  %v1905_v11 = vsel %vm322_vm2, %v1893_v5, 0 }
 0x7ef   :  { %2643 = vmatpush3.bf16.xpose.msra.mxu1 %v1905_v11 }
 0x7f0   :  { %2644 = vmatprep.subr.bf16.mxu1 %v2804_v1 }
 0x7f7   :  { %2645 = vmatpush3.bf16.xpose.msra.mxu1 %v1902_v44 }
 0x7f8   :  { %2646 = vmatprep.subr.bf16.mxu1 %v2804_v1 }
 0x7ff   :  { %2647 = vmatpush3.bf16.xpose.msra.mxu1 %v1899_v15  ;;  %v2288_v15 = vld [vmem:[%s3522_s19] ss:$0 sm:$0xff] }
 0x800   :  { %2664 = vmatprep.subr.bf16.mxu1 %v2804_v1 }
 0x806   :  { %2649 = vmatmul.mubr.msk.bf16.vlgmr.msra.gmra.mxu1 %vm322_vm2, %v1890_v8 }
 0x807   :  { %2668 = vmatprep.mubr.msk.bf16.mxu1 %vm2805_vm4, %v2804_v1  ;;  %2665 = vmatpush3.bf16.msra.mxu1 %v2718_v46 }
 0x808   :  { %2666 = vmatprep.subr.bf16.mxu1 %v2804_v1 }
 0x80b   :  { %2667 = vmatpush3.bf16.msra.mxu1 %v2719_v13 }
 0x80c   :  { %2672 = vmatprep.subr.bf16.mxu1 %v2804_v1 }
 0x824   :  { %v1836_v58 = vpop.permute.xlu1 %1835 }
 0x828   :  { %v1834_v19 = vpop.permute.xlu1 %1833 }
 0x82d   :  { %v1840_v23 = vpop.permute.xlu1 %1839 }
 0x82e   :  { %2629 = vmatpush3.bf16.msra.mxu0 %v1840_v23 }
 0x82f   :  { %2630 = vmatprep.subr.bf16.mxu0 %v2804_v1  ;;  %v1838_v18 = vpop.permute.xlu0 %1837 }
 0x832   :  { %2631 = vmatpush3.bf16.msra.mxu0 %v1838_v18 }
 0x833   :  { %2632 = vmatprep.subr.bf16.mxu0 %v2804_v1 }
 0x836   :  { %2633 = vmatpush3.bf16.msra.mxu0 %v1836_v58 }
 0x837   :  { %2634 = vmatprep.subr.bf16.mxu0 %v2804_v1 }
 0x83a   :  { %2635 = vmatpush3.bf16.msra.mxu0 %v1834_v19 }
 0x83b   :  { %2652 = vmatprep.subr.bf16.mxu0 %v2804_v1 }
 0x858   :  { %v1971_v16 = vpop.permute.xlu0 %1970 }
 0x89b   :  { %v1813_v25 = vpop.f32.mrf.mxu0 }
 0x89c   :  { %v1819_v22 = vsel %vm549_vm3, %v1813_v25, -inf }
 0x89d   :  { %1820 = vmax.xlane.f32.xlu1 %v1819_v22  ;;  %v2626_v42 = vpop.f32.mrf.mxu0 }
 0x89f   :  { %v1816_v26 = vpop.f32.mrf.mxu0 }
 0x8a1   :  { %v2627_v49 = vpop.f32.mrf.mxu0 }
 0x8a2   :  { %v2159_v49 = vlaneseq }
 0x8ae   :  { %1968 = vrot.lane.b32.xlu1 %v1893_v5, %s2802_s25  ;;  %v2284_v5 = vld [vmem:[%s3521_s17] ss:$0 sm:$0xff] }
 0x8b2   :  { %1964 = vrot.lane.b32.xlu1 %v1891_v41, %s2802_s25 }
 0x8c6   :  { %v1944_v28 = vpop.f32.mrf.mxu1 }
 0x8c7   :  { %v1950_v6 = vsel %vm549_vm3, %v1944_v28, -inf }
 0x8c8   :  { %1951 = vmax.xlane.f32.xlu0 %v1950_v6  ;;  %v2650_v24 = vpop.f32.mrf.mxu1 }
 0x8ca   :  { %v1947_v54 = vpop.f32.mrf.mxu1 }
 0x8cc   :  { %v2651_v33 = vpop.f32.mrf.mxu1 }
 0x8de   :  { %1966 = vrot.lane.b32.xlu0 %v1892_v50, %s2802_s25 }
 0x926   :  { %v1821_v32 = vpop.xlane.xlu1 %1820 }
 0x927   :  { %v1822_v37 = vsub.f32 %v1813_v25, %v1821_v32 }
 0x929   :  { %v1823_v39 = vmul.f32 1.442695, %v1822_v37 }
 0x92a   :  { %v1969_v34 = vpop.permute.xlu1 %1968 }
 0x92b   :  { %2786 = vpow2.f32 %v1823_v39 }
 0x92e   :  { %v1965_v52 = vpop.permute.xlu1 %1964 }
 0x938   :  { %v2787_v36 = vpop.eup %2786 }
 0x939   :  { %v1825_v40 = vsel %vm549_vm3, %v2787_v36, 0.0  ;;  %v1828_v47 = vpack.c.bf16 %v2787_v36, %v2787_v36 }
 0x93a   :  { %1826 = vadd.xlane.f32.xlu0 %v1825_v40 }
 0x93b   :  { %2637 = vmatmul.mubr.msk.bf16.vlgmr.msra.gmra.mxu0 %vm549_vm3, %v1828_v47 }
 0x93c   :  { %2653 = vmatpush3.bf16.msra.mxu0 %v1971_v16  ;;  %2660 = vmatprep.mubr.msk.bf16.mxu0 %vm2805_vm4, %v2804_v1 }
 0x93d   :  { %2654 = vmatprep.subr.bf16.mxu0 %v2804_v1 }
 0x940   :  { %2655 = vmatpush3.bf16.msra.mxu0 %v1969_v34 }
 0x941   :  { %2656 = vmatprep.subr.bf16.mxu0 %v2804_v1 }
 0x951   :  { %v1952_v17 = vpop.xlane.xlu0 %1951 }
 0x952   :  { %v1953_v10 = vsub.f32 %v1944_v28, %v1952_v17  ;;  %v2160_v28 = vand.u32 127, %v2159_v49 }
 0x954   :  { %v1954_v35 = vmul.f32 1.442695, %v1953_v10  ;;  %vm2161_vm5 = vcmp.ge.s32.totalorder %v2160_v28, 4 }
 0x955   :  { %v1967_v48 = vpop.permute.xlu0 %1966 }
 0x956   :  { %2788 = vpow2.f32 %v1954_v35  ;;  %2657 = vmatpush3.bf16.msra.mxu0 %v1967_v48 }
 0x957   :  { %2658 = vmatprep.subr.bf16.mxu0 %v2804_v1 }
 0x95a   :  { %2659 = vmatpush3.bf16.msra.mxu0 %v1965_v52 }
 0x963   :  { %v2789_v0 = vpop.eup %2788 }
 0x964   :  { %v1956_v45 = vsel %vm549_vm3, %v2789_v0, 0.0  ;;  %v1959_v21 = vpack.c.bf16 %v2789_v0, %v2789_v0 }
 0x965   :  { %1957 = vadd.xlane.f32.xlu1 %v1956_v45 }
 0x966   :  { %2661 = vmatmul.mubr.msk.bf16.vlgmr.msra.gmra.mxu0 %vm549_vm3, %v1959_v21 }
 0x9c3   :  { %v1827_v30 = vpop.xlane.xlu0 %1826 }
 0x9c4   :  { %2790 = vrcp.f32 %v1827_v30 }
 0x9d1   :  { %v2791_v60 = vpop.eup %2790 }
 0x9ee   :  { %v1958_v62 = vpop.xlane.xlu1 %1957 }
 0x9ef   :  { %2792 = vrcp.f32 %v1958_v62 }
 0x9fb   :  { %v1882_v51 = vpop.f32.mrf.mxu0 }
 0x9fc   :  { %v2793_v57 = vpop.eup %2792  ;;  %v1889_v2 = vmul.f32 %v2791_v60, %v1882_v51 }
 0x9fd   :  { %v2638_v29 = vpop.f32.mrf.mxu0 }
 0x9ff   :  { %v1885_v53 = vpop.f32.mrf.mxu0 }
 0xa01   :  { %v2639_v55 = vpop.f32.mrf.mxu0 }
 0xa26   :  { %v2013_v63 = vpop.f32.mrf.mxu0 }
 0xa27   :  { %v2020_v3 = vmul.f32 %v2793_v57, %v2013_v63 }
 0xa28   :  { %v2662_v20 = vpop.f32.mrf.mxu0 }
 0xa29   :  { %v2021_v27 = vpack.c.bf16 %v2020_v3, %v1889_v2 }
 0xa2a   :  { %v2016_v4 = vpop.f32.mrf.mxu0 }
 0xa2b   :  { %2669 = vmatmul.mubr.msk.bf16.vlgmr.msra.gmra.mxu1 %vm322_vm2, %v2021_v27 }
 0xa2c   :  { %v2663_v31 = vpop.f32.mrf.mxu0  ;;  %2676 = vmatprep.mubr.msk.bf16.mxu1 %vm2805_vm4, %v2804_v1  ;;  %2673 = vmatpush3.bf16.msra.mxu1 %v2720_v14 }
 0xa2d   :  { %2674 = vmatprep.subr.bf16.mxu1 %v2804_v1 }
 0xa30   :  { %2675 = vmatpush3.bf16.msra.mxu1 %v2721_v38 }
 0xaeb   :  { %v2082_v12 = vpop.f32.mrf.mxu1 }
 0xaec   :  { %v2083_v43 = vadd.f32 %v2284_v5, %v2082_v12 }
 0xaed   :  { %v2670_v11 = vpop.f32.mrf.mxu1 }
 0xaee   :  { %v2089_v56 = vadd.f32 %v2083_v43, %v3348_v61 }
 0xaef   :  { %v2085_v50 = vpop.f32.mrf.mxu1 }
 0xaf0   :  { %v2086_v7 = vadd.f32 %v2284_v5, %v2085_v50 }
 0xaf1   :  { %v2671_v44 = vpop.f32.mrf.mxu1 }
 0xaf2   :  { %v2090_v41 = vadd.f32 %v2086_v7, %v3353_v59 }
 0xaf4   :  { %v2091_v1 = vpack.c.bf16 %v2090_v41, %v2089_v56 }
 0xaf6   :  { %2677 = vmatmul.mubr.msk.bf16.vlgmr.msra.gmra.mxu1 %vm322_vm2, %v2091_v1 }
 0xbb6   :  { %v2152_v9 = vpop.f32.mrf.mxu1 }
 0xbb7   :  { %v2153_v8 = vadd.f32 %v2288_v15, %v2152_v9 }
 0xbb8   :  { %v2678_v58 = vpop.f32.mrf.mxu1 }
 0xbb9   :  { %v2292_v19 = vmul.f32 -1.442695, %v2153_v8 }
 0xbba   :  { %v2155_v23 = vpop.f32.mrf.mxu1 }
 0xbbb   :  { %2794 = vpow2.f32 %v2292_v19  ;;  %v2156_v18 = vadd.f32 %v2288_v15, %v2155_v23 }
 0xbbc   :  { %v2679_v25 = vpop.f32.mrf.mxu1 }
 0xbbd   :  { %v2293_v22 = vmul.f32 -1.442695, %v2156_v18 }
 0xbbf   :  { %2796 = vpow2.f32 %v2293_v22 }
 0xbc8   :  { %v2795_v61 = vpop.eup %2794 }
 0xbc9   :  { %v2168_v42 = vadd.f32 1.0, %v2795_v61 }
 0xbcb   :  { %2798 = vrcp.f32 %v2168_v42 }
 0xbcc   :  { %v2797_v59 = vpop.eup %2796 }
 0xbcd   :  { %v2169_v26 = vadd.f32 1.0, %v2797_v59 }
 0xbcf   :  { %2800 = vrcp.f32 %v2169_v26 }
 0xbd8   :  { %v2799_v6 = vpop.eup %2798 }
 0xbd9   :  { %v2174_v24 = vsel %vm2161_vm5, %v2799_v6, %v2153_v8 }
 0xbda   :  { %2177 = vst.msk [vmem:[%s3523_s20] sm:$0xff] %vm2176_vm6, %v2174_v24 }
 0xbdc   :  { %v2801_v54 = vpop.eup %2800 }
 0xbdd   :  { %v2175_v33 = vsel %vm2161_vm5, %v2801_v54, %v2156_v18 }
 0xbde   :  { %2178 = vst.msk [vmem:[%s3523_s20 + $0x8] sm:$0xff] %vm2176_vm6, %v2175_v33 }

</bundles_post_ra>
